<compile_context>
chip_gen: v7x
topology: tpu7x:2x2x1
jax: 0.10.0
libtpu: 0.0.40
codegen_flags: <defaults>
</compile_context>

<pallas_src>
import math
from functools import partial

import jax
import jax.numpy as jnp
from jax import lax
from jax.experimental import pallas as pl
from jax.experimental.pallas import tpu as pltpu

_LANE = 128  # TPU vreg lane width; batch tiles / output are lane-aligned.


def _round_up(x, m):
    return -(-x // m) * m


def _critic_kernel(x_ref, w1_ref, b1_ref, w2t_ref, b2_ref, w3_ref, b3_ref,
                   o_ref, *, use_bf16_operands):
    """Fused 3-layer value MLP for one (TB, D) batch tile.

    Weights/biases are VMEM-resident across grid steps (index_map -> (0, 0)).
    Output is a lane-dense (1, TB) row of per-row values (no transpose needed:
    fc2 already flips the batch onto the lane axis via a transpose-rhs dot).
    """
    x = x_ref[...]                      # (TB, D)
    w1 = w1_ref[...]                    # (D, H)
    if use_bf16_operands:
        x = x.astype(jnp.bfloat16)
        w1 = w1.astype(jnp.bfloat16)

    # fc1 + ReLU (MXU, f32 accumulation): (TB, H)
    h1 = jnp.dot(x, w1, preferred_element_type=jnp.float32) + b1_ref[...]
    h1 = jnp.maximum(h1, 0.0)

    # fc2 + ReLU in transposed orientation: contract last dims of both
    # operands (the attention q·kᵀ pattern) -> (H, TB); batch now on lanes.
    w2t = w2t_ref[...]                  # (H, H) in (out, in) layout
    h1_in = h1
    if use_bf16_operands:
        w2t = w2t.astype(jnp.bfloat16)
        h1_in = h1.astype(jnp.bfloat16)
    h2t = lax.dot_general(w2t, h1_in, (((1,), (1,)), ((), ())),
                          preferred_element_type=jnp.float32)
    h2t = jnp.maximum(h2t + b2_ref[...], 0.0)        # (H, TB)

    # fc3 (output dim 1): VPU multiply + sublane reduce, no MXU pass.  The
    # result is already lane-major, so the store is a compact lane-dense row.
    v = jnp.sum(h2t * w3_ref[...], axis=0, keepdims=True) + b3_ref[...]  # (1, TB)
    o_ref[...] = v.astype(o_ref.dtype)


def critic_forward(x, params, *, tile_b=2048, use_bf16_operands=False):
    """Pallas critic forward.

    x: (B, obs_shape + n_agents) float32
    params: dict with w1 (D,H), b1 (1,H), w2 (H,H), b2 (1,H), w3 (H,1), b3 (1,1)
    returns: (B, 1) float32
    """
    B, D = x.shape
    w1, b1 = params["w1"], params["b1"]
    w2, b2 = params["w2"], params["b2"]
    w3, b3 = params["w3"], params["b3"]
    H = w1.shape[1]

    # One-time (tiny) wrapper-side relayouts so the kernel's transposed second
    # half needs no in-kernel transposes: fc2 weight in (out, in) layout,
    # fc2/fc3 params as columns.
    w2_t = w2.T                      # (H, H)
    b2_col = b2.reshape(H, 1)        # (H, 1)
    w3_col = w3.reshape(H, 1)        # (H, 1)
    b3_s = b3.reshape(1, 1)          # (1, 1)

    # Batch tile: lane-aligned (batch ends up on lanes in the output), big
    # enough to amortize the ~0.35 us/grid-step overhead, capped so that
    #  - it never exceeds the (lane-padded) batch,
    #  - the grid has >= 2 steps when B allows, so the "parallel" batch axis
    #    can span both TensorCores on v7x.
    tb = max(_LANE, min(_round_up(tile_b, _LANE), _round_up(B, _LANE)))
    if B >= 2 * _LANE:
        tb = min(tb, _round_up(-(-B // 2), _LANE))
    b_pad = _round_up(B, tb)
    if b_pad != B:
        x = jnp.pad(x, ((0, b_pad - B), (0, 0)))
    grid = (b_pad // tb,)

    def resident(shape):
        # Same block every grid step -> stays VMEM-resident, DMA'd once.
        return pl.BlockSpec(shape, lambda i: (0, 0))

    # Advisory cost estimate (consistent padded-batch accounting, compact out).
    flops = 2 * b_pad * (D * H + H * H + H)
    bytes_accessed = 4 * (
        b_pad * D                                                   # x read
        + w1.size + b1.size + w2.size + b2.size + w3.size + b3.size  # weights
        + b_pad                                                     # values out
    )

    kernel = partial(_critic_kernel, use_bf16_operands=use_bf16_operands)

    out_row = pl.pallas_call(
        kernel,
        out_shape=jax.ShapeDtypeStruct((1, b_pad), jnp.float32),
        grid=grid,
        in_specs=[
            pl.BlockSpec((tb, D), lambda i: (i, 0)),  # x: tiled over batch
            resident((D, H)),                         # w1
            resident((1, H)),                         # b1 (row)
            resident((H, H)),                         # w2ᵀ (out, in)
            resident((H, 1)),                         # b2 (column)
            resident((H, 1)),                         # w3 (column)
            resident((1, 1)),                         # b3
        ],
        out_specs=pl.BlockSpec((1, tb), lambda i: (0, i)),  # lane-dense values
        compiler_params=pltpu.CompilerParams(
            dimension_semantics=("parallel",),
        ),
        cost_estimate=pl.CostEstimate(
            flops=flops, transcendentals=0, bytes_accessed=bytes_accessed
        ),
    )(x, w1, b1, w2_t, b2_col, w3_col, b3_s)

    return out_row[0, :B].reshape(B, 1)


def init_critic_params(key, in_dim, hidden_dim):
    """Deterministic init mimicking torch.nn.Linear default (+/- 1/sqrt(fan_in))."""
    keys = jax.random.split(key, 6)

    def lin(kw, kb, fan_in, fan_out):
        bound = 1.0 / math.sqrt(fan_in)
        w = jax.random.uniform(kw, (fan_in, fan_out), jnp.float32, -bound, bound)
        b = jax.random.uniform(kb, (1, fan_out), jnp.float32, -bound, bound)
        return w, b

    w1, b1 = lin(keys[0], keys[1], in_dim, hidden_dim)
    w2, b2 = lin(keys[2], keys[3], hidden_dim, hidden_dim)
    w3, b3 = lin(keys[4], keys[5], hidden_dim, 1)
    return {"w1": w1, "b1": b1, "w2": w2, "b2": b2, "w3": w3, "b3": b3}


def critic_ref(x, params):
    """Pure-JAX reference for correctness checking."""
    h1 = jnp.maximum(x @ params["w1"] + params["b1"], 0.0)
    h2 = jnp.maximum(h1 @ params["w2"] + params["b2"], 0.0)
    return h2 @ params["w3"] + params["b3"]


if __name__ == "__main__":
    # Module-consistent shapes: obs_shape=28, n_agents=4 -> in_dim=32,
    # hidden_dim=128 (lane-aligned).  batch=1024 exercises the batch-tiled
    # grid (2 parallel steps after the >=2-step cap).
    obs_shape, n_agents, hidden_dim, batch = 28, 4, 128, 1024
    in_dim = obs_shape + n_agents

    key = jax.random.PRNGKey(0)
    k_x, k_p = jax.random.split(key)

    x = jax.random.normal(k_x, (batch, in_dim), dtype=jnp.float32)
    params = init_critic_params(k_p, in_dim, hidden_dim)

    v = jax.block_until_ready(critic_forward(x, params))
    v_ref = critic_ref(x, params)
    assert v.shape == (batch, 1), v.shape
    assert jnp.allclose(v, v_ref, atol=1e-4, rtol=1e-4), "mismatch vs reference"

    # Small ragged batch (padding path, single grid step).
    x_small = x[:17]
    v_small = jax.block_until_ready(critic_forward(x_small, params))
    assert v_small.shape == (17, 1)
    assert jnp.allclose(v_small, v_ref[:17], atol=1e-4, rtol=1e-4), "ragged mismatch"

    # Optional bf16-operand MXU path (native dtype on v6e/v7x), f32 accumulate.
    v_bf16 = jax.block_until_ready(
        critic_forward(x, params, use_bf16_operands=True))
    assert v_bf16.shape == (batch, 1)
    assert jnp.allclose(v_bf16, v_ref, atol=5e-2, rtol=5e-2), "bf16 path mismatch"

    print("KERNEL_OK")
</pallas_src>

<mosaic_0001>
module attributes {stable_mosaic.version = 11 : i64} {
  func.func @_critic_kernel(%arg0: i32, %arg1: memref<512x32xf32, #tpu.memory_space<vmem>>, %arg2: memref<32x128xf32, #tpu.memory_space<vmem>>, %arg3: memref<1x128xf32, #tpu.memory_space<vmem>>, %arg4: memref<128x128xf32, #tpu.memory_space<vmem>>, %arg5: memref<128x1xf32, #tpu.memory_space<vmem>>, %arg6: memref<128x1xf32, #tpu.memory_space<vmem>>, %arg7: memref<1x1xf32, #tpu.memory_space<vmem>>, %arg8: memref<1x512xf32, #tpu.memory_space<vmem>>) attributes {dimension_semantics = [#tpu.dimension_semantics<parallel>], iteration_bounds = array<i64: 2>, scalar_prefetch = 0 : i64, scratch_operands = 0 : i64, tpu.core_type = #tpu.core_type<tc>, window_params = [{transform_indices = @transform_0, window_bounds = array<i64: 512, 32>}, {pipeline_mode = #tpu.pipeline_mode<synchronous>, transform_indices = @transform_1, window_bounds = array<i64: 32, 128>}, {pipeline_mode = #tpu.pipeline_mode<synchronous>, transform_indices = @transform_2, window_bounds = array<i64: 1, 128>}, {pipeline_mode = #tpu.pipeline_mode<synchronous>, transform_indices = @transform_3, window_bounds = array<i64: 128, 128>}, {pipeline_mode = #tpu.pipeline_mode<synchronous>, transform_indices = @transform_4, window_bounds = array<i64: 128, 1>}, {pipeline_mode = #tpu.pipeline_mode<synchronous>, transform_indices = @transform_5, window_bounds = array<i64: 128, 1>}, {pipeline_mode = #tpu.pipeline_mode<synchronous>, transform_indices = @transform_6, window_bounds = array<i64: 1, 1>}, {transform_indices = @transform_7, window_bounds = array<i64: 1, 512>}]} {
    %c0 = arith.constant 0 : index
    %c0_0 = arith.constant 0 : index
    %0 = vector.load %arg1[%c0, %c0_0] : memref<512x32xf32, #tpu.memory_space<vmem>>, vector<512x32xf32>
    %c0_1 = arith.constant 0 : index
    %c0_2 = arith.constant 0 : index
    %1 = vector.load %arg2[%c0_1, %c0_2] : memref<32x128xf32, #tpu.memory_space<vmem>>, vector<32x128xf32>
    %cst = arith.constant dense<0.000000e+00> : vector<512x128xf32>
    %2 = tpu.matmul %0, %1, %cst {dimension_numbers = #tpu.dot_dimension_numbers<[1], [0], [0], [1], [0, 0, 1, 1], [], []>} : vector<512x32xf32>, vector<32x128xf32>, vector<512x128xf32> -> vector<512x128xf32>
    %c0_3 = arith.constant 0 : index
    %c0_4 = arith.constant 0 : index
    %3 = vector.load %arg3[%c0_3, %c0_4] : memref<1x128xf32, #tpu.memory_space<vmem>>, vector<1x128xf32>
    %4 = vector.broadcast %3 : vector<1x128xf32> to vector<512x128xf32>
    %5 = arith.addf %2, %4 : vector<512x128xf32>
    %cst_5 = arith.constant 0.000000e+00 : f32
    %6 = vector.broadcast %cst_5 : f32 to vector<512x128xf32>
    %7 = arith.maximumf %5, %6 : vector<512x128xf32>
    %c0_6 = arith.constant 0 : index
    %c0_7 = arith.constant 0 : index
    %8 = vector.load %arg4[%c0_6, %c0_7] : memref<128x128xf32, #tpu.memory_space<vmem>>, vector<128x128xf32>
    %cst_8 = arith.constant dense<0.000000e+00> : vector<128x512xf32>
    %9 = tpu.matmul %8, %7, %cst_8 {dimension_numbers = #tpu.dot_dimension_numbers<[1], [1], [0], [0], [0, 0, 1, 0], [], []>} : vector<128x128xf32>, vector<512x128xf32>, vector<128x512xf32> -> vector<128x512xf32>
    %c0_9 = arith.constant 0 : index
    %c0_10 = arith.constant 0 : index
    %10 = vector.load %arg5[%c0_9, %c0_10] : memref<128x1xf32, #tpu.memory_space<vmem>>, vector<128x1xf32>
    %11 = vector.broadcast %10 : vector<128x1xf32> to vector<128x512xf32>
    %12 = arith.addf %9, %11 : vector<128x512xf32>
    %cst_11 = arith.constant 0.000000e+00 : f32
    %13 = vector.broadcast %cst_11 : f32 to vector<128x512xf32>
    %14 = arith.maximumf %12, %13 : vector<128x512xf32>
    %c0_12 = arith.constant 0 : index
    %c0_13 = arith.constant 0 : index
    %15 = vector.load %arg6[%c0_12, %c0_13] : memref<128x1xf32, #tpu.memory_space<vmem>>, vector<128x1xf32>
    %16 = vector.broadcast %15 : vector<128x1xf32> to vector<128x512xf32>
    %17 = arith.mulf %14, %16 : vector<128x512xf32>
    %cst_14 = arith.constant dense<0.000000e+00> : vector<512xf32>
    %18 = vector.multi_reduction <add>, %17, %cst_14 [0] : vector<128x512xf32> to vector<512xf32>
    %19 = vector.shape_cast %18 : vector<512xf32> to vector<1x512xf32>
    %c0_15 = arith.constant 0 : index
    %c0_16 = arith.constant 0 : index
    %20 = vector.load %arg7[%c0_15, %c0_16] : memref<1x1xf32, #tpu.memory_space<vmem>>, vector<1x1xf32>
    %21 = vector.broadcast %20 : vector<1x1xf32> to vector<1x512xf32>
    %22 = arith.addf %19, %21 : vector<1x512xf32>
    %c0_17 = arith.constant 0 : index
    %c0_18 = arith.constant 0 : index
    %23 = vector.load %arg8[%c0_17, %c0_18] : memref<1x512xf32, #tpu.memory_space<vmem>>, vector<1x512xf32>
    tpu.vector_store %arg8[%c0_17, %c0_18], %22 {strides = array<i32>} : memref<1x512xf32, #tpu.memory_space<vmem>>, vector<1x512xf32>,
    return
  }
  func.func @transform_0(%arg0: i32) -> (i32, i32) {
    %c0_i32 = arith.constant 0 : i32
    %c0_i32_0 = arith.constant 0 : i32
    return %arg0, %c0_i32 : i32, i32
  }
  func.func @transform_1(%arg0: i32) -> (i32, i32) {
    %c0_i32 = arith.constant 0 : i32
    %c0_i32_0 = arith.constant 0 : i32
    %c0_i32_1 = arith.constant 0 : i32
    return %c0_i32, %c0_i32_0 : i32, i32
  }
  func.func @transform_2(%arg0: i32) -> (i32, i32) {
    %c0_i32 = arith.constant 0 : i32
    %c0_i32_0 = arith.constant 0 : i32
    %c0_i32_1 = arith.constant 0 : i32
    return %c0_i32, %c0_i32_0 : i32, i32
  }
  func.func @transform_3(%arg0: i32) -> (i32, i32) {
    %c0_i32 = arith.constant 0 : i32
    %c0_i32_0 = arith.constant 0 : i32
    %c0_i32_1 = arith.constant 0 : i32
    return %c0_i32, %c0_i32_0 : i32, i32
  }
  func.func @transform_4(%arg0: i32) -> (i32, i32) {
    %c0_i32 = arith.constant 0 : i32
    %c0_i32_0 = arith.constant 0 : i32
    %c0_i32_1 = arith.constant 0 : i32
    return %c0_i32, %c0_i32_0 : i32, i32
  }
  func.func @transform_5(%arg0: i32) -> (i32, i32) {
    %c0_i32 = arith.constant 0 : i32
    %c0_i32_0 = arith.constant 0 : i32
    %c0_i32_1 = arith.constant 0 : i32
    return %c0_i32, %c0_i32_0 : i32, i32
  }
  func.func @transform_6(%arg0: i32) -> (i32, i32) {
    %c0_i32 = arith.constant 0 : i32
    %c0_i32_0 = arith.constant 0 : i32
    %c0_i32_1 = arith.constant 0 : i32
    return %c0_i32, %c0_i32_0 : i32, i32
  }
  func.func @transform_7(%arg0: i32) -> (i32, i32) {
    %c0_i32 = arith.constant 0 : i32
    %c0_i32_0 = arith.constant 0 : i32
    return %c0_i32, %arg0 : i32, i32
  }
}

</mosaic_0001>

<bundles_post_ra>
// kernel: tpu_custom_call.1
= control target key start
LH: loop header
LB: loop body
LE: loop exit
PB: predicated region body
PF: predicated region fallthrough
CT: control target
= control target key end

     0   :  { %s3277_s0 = inlined_call_operand.vmem [shape: f32[1024,32], index: 0, kind: input, shape index: {}]   ;;  %s3278_s1 = inlined_call_operand.vmem [shape: f32[32,128], index: 1, kind: input, shape index: {}]   ;;  %s3279_s2 = inlined_call_operand.vmem [shape: f32[1,128], index: 2, kind: input, shape index: {}]   ;;  %s3280_s3 = inlined_call_operand.vmem [shape: f32[128,128], index: 3, kind: input, shape index: {}]   ;;  %s3281_s4 = inlined_call_operand.vmem [shape: f32[128,1], index: 4, kind: input, shape index: {}]   ;;  %s3282_s5 = inlined_call_operand.vmem [shape: f32[128,1], index: 5, kind: input, shape index: {}]   ;;  %s3283_s6 = inlined_call_operand.<no memory space> [shape: f32[1,1], index: 6, kind: input, shape index: {}]   ;;  %s3284_s7 = inlined_call_operand.hbm [shape: f32[1,1024], index: 7, kind: output, shape index: {}]  }
   0x1   :  { %v12_v0 = vstv %s3283_s6 }
   0x2   :  { %13 = vst [vmem:[#allocation2] sm:$0x1] %v12_v0 }
   0x3   :  { %14 = vsyncpa [#allocation4], 0 }
   0x4   :  { %16 = vsyncpa [#allocation4 + $0x1], 0  ;;  %s2482_s26 = smov 0   ;;  %s2484_s27 = smov 0  }
   0x5   :  { %s2486_s28 = smov 0   ;;  %s2488_s29 = smov 0  }
   0x6 LB: > { %s1862_s6 = sadd.s32 4294967295, %s2434_s29   ;;  %s1863_s30 = sadd.s32 4294967294, %s2434_s29   ;;  %s2434_s29 = sphi %s2488_s29, %s3290_s29   ;;  %s2430_s28 = sphi %s2486_s28, %s3289_s28   ;;  %s2426_s27 = sphi %s2484_s27, %s3288_s27   ;;  %s2422_s26 = sphi %s2482_s26, %s3287_s26  }
   0x7   : > { %s2505_s8 = sadd.s32 1, %s2434_s29   ;;  %s181_s9 = sadd.s32 1, %s2430_s28 }
   0x8   : > { %s178_s10 = ssub.s32 %s2434_s29, %s2505_s8  ;;  %p191_p0 = scmp.ne.s32.totalorder %s2430_s28, %s2426_s27 }
   0x9   : > { %p179_p1 = scmp.eq.s32.totalorder %s178_s10, 0  ;;  %p192_p2 = scmp.eq.s32.totalorder %s1862_s6, 1 }
   0xa   : > { %p197_p3 = scmp.ne.s32.totalorder %s2426_s27, %s2422_s26  ;;  %p198_p4 = scmp.eq.s32.totalorder %s1863_s30, 1 }
   0xb   : > { %s2515_s11 = scalar_select %p179_p1, %s2430_s28, %s181_s9  }
   0xc   : > { %p2517_p5 = por %p192_p2, %p191_p0  ;;  %p2521_p6 = por %p198_p4, %p197_p3 }
   0xd   : > { %p1866_p7 = scmp.ge.s32.totalorder %s2434_s29, 1  ;;  %p243_p8 = scmp.lt.s32.totalorder %s2434_s29, 3 }
   0xf   : > { %p244_p9 = pnand %p1866_p7, %p243_p8 }
  0x10   : > { %v346_v1 = vld [vmem:[%s3278_s1] sm:$0xff] (!%p244_p9)  ;;  %v347_v2 = vld [vmem:[%s3278_s1 + $0x8] sm:$0xff] (!%p244_p9)  ;;  %v348_v3 = vld [vmem:[%s3278_s1 + $0x10] sm:$0xff] (!%p244_p9)  ;;  %s2536_s20 = sshll.u32 (!%p244_p9), %s1862_s6, 6  ;;  %vm357_vm0 = vcmask (!%p244_p9), 261120   ;;  %s272_s21 = sand.u32 (!%p244_p9), 1, %s2426_s27  }
  0x11   : > { %247 = sbr.rel (%p244_p9) target bundleno = 708 (0x2c4), region = 48  ;;  %v2241_v4 = vpack.c.bf16 (!%p244_p9), %v347_v2, %v346_v1  ;;  %v349_v5 = vld [vmem:[%s3278_s1 + $0x18] sm:$0xff] (!%p244_p9)  ;;  %p276_p10 = scmp.lt.s32.totalorder (!%p244_p9), %s2536_s20, 127 }
  0x12   : > { %v2245_v6 = vpack.c.bf16 (!%p244_p9), %v349_v5, %v348_v3  ;;  %s1867_s22 = sshll.u32 (!%p244_p9), %s272_s21, 2  ;;  %s1790_s9 = scalar_lea.sflag (!%p244_p9), [#allocation4], %s272_s21 }
  0x13   : > { %2242 = vmatprep.subr.bf16.mxu0 (!%p244_p9), %v2241_v4  ;;  %s2438_s14 = smov (!%p244_p9), [#allocation3]  }
  0x14   : > { %2244 = vmatpush3.bf16.msra.mxu0 (!%p244_p9), %v2241_v4  ;;  %s2376_s15 = sshll.u32 (!%p244_p9), %s2438_s14, 4  ;;  %s2377_s15 = int_to_ptr.vmem [resolvable:$false] %s2376_s15 }
  0x15   : > { %2246 = vmatprep.subr.bf16.mxu0 (!%p244_p9), %v2245_v6  ;;  %s2378_s16 = scalar_lea.vmem (!%p244_p9), %s2377_s15, 128 }
  0x18   : > { %s277_s23 = scalar_select %p276_p10, %s2536_s20, 127  ;;  %2248 = vmatpush3.bf16.msra.mxu0 %v2245_v6 }
  0x1a   : > { %s1869_s24 = sshll.u32 %s277_s23, 3  ;;  %s274_s23 = scalar_lea.vmem [#allocation3], %s1867_s22 }
  0x1b   : > { %s2546_s6 = scalar_lea.vmem %s3277_s0, %s1869_s24  ;;  %s1804_s24 = sshll.u32 %s274_s23, 4  ;;  %s3237_s24 = int_to_ptr.vmem [resolvable:$true] %s1804_s24 }
  0x1c   : > { %v282_v7 = vld [vmem:[%s2546_s6] sm:$0xff]  ;;  %v283_v8 = vld [vmem:[%s2546_s6 + $0x8] sm:$0xff]  ;;  %v284_v9 = vld [vmem:[%s2546_s6 + $0x10] sm:$0xff]  ;;  %s2372_s10 = scalar_lea.vmem %s3237_s24, 64  ;;  %p2379_p0 = scmp.lt.s32.totalorder %s3237_s24, %s2377_s15 }
  0x1d   : > { %2145 = vmatprep.mubr.msk.f32.mxu0 %vm357_vm0, %v282_v7  ;;  %v285_v10 = vld [vmem:[%s2546_s6 + $0x18] sm:$0xff]  ;;  %v286_v11 = vld [vmem:[%s2546_s6 + $0x20] sm:$0xff]  ;;  %v287_v12 = vld [vmem:[%s2546_s6 + $0x28] sm:$0xff]  ;;  %p2373_p11 = scmp.ne.s32.totalorder %s3237_s24, %s2372_s10  ;;  %p2380_p1 = scmp.lt.s32.totalorder %s2378_s16, %s2372_s10 }
  0x1e   : > { %2146 = vmatmul.mubr.msk.f32.vlgmr.msra.gmra.mrb[0].mxu0 %vm357_vm0, %v283_v8  ;;  %v288_v13 = vld [vmem:[%s2546_s6 + $0x30] sm:$0xff]  ;;  %v289_v14 = vld [vmem:[%s2546_s6 + $0x38] sm:$0xff]  ;;  %v290_v15 = vld [vmem:[%s2546_s6 + $0x40] sm:$0xff] }
  0x1f   : > { %2148 = vmatprep.mubr.msk.f32.mxu0 %vm357_vm0, %v284_v9  ;;  %v291_v16 = vld [vmem:[%s2546_s6 + $0x48] sm:$0xff]  ;;  %v292_v17 = vld [vmem:[%s2546_s6 + $0x50] sm:$0xff]  ;;  %v293_v18 = vld [vmem:[%s2546_s6 + $0x58] sm:$0xff]  ;;  %p2374_p12 = pnand %p2373_p11, %p2517_p5  ;;  %p2381_p2 = por %p2380_p1, %p2379_p0 }
  0x20   : > { %v294_v19 = vld [vmem:[%s2546_s6 + $0x60] sm:$0xff]  ;;  %v295_v20 = vld [vmem:[%s2546_s6 + $0x68] sm:$0xff]  ;;  %v296_v21 = vld [vmem:[%s2546_s6 + $0x70] sm:$0xff] }
  0x21   : > { %v297_v22 = vld [vmem:[%s2546_s6 + $0x78] sm:$0xff]  ;;  %v298_v23 = vld [vmem:[%s2546_s6 + $0x80] sm:$0xff]  ;;  %v299_v24 = vld [vmem:[%s2546_s6 + $0x88] sm:$0xff]  ;;  %p2375_p13 = pneg %p2374_p12 }
  0x22   : > { %2149 = vmatmul.mubr.msk.f32.gmra.mrb[2].mxu0 %vm357_vm0, %v285_v10  ;;  %v300_v25 = vld [vmem:[%s2546_s6 + $0x90] sm:$0xff]  ;;  %v301_v26 = vld [vmem:[%s2546_s6 + $0x98] sm:$0xff]  ;;  %v302_v27 = vld [vmem:[%s2546_s6 + $0xa0] sm:$0xff] }
  0x23   : > { %2151 = vmatprep.mubr.msk.f32.mxu0 %vm357_vm0, %v286_v11  ;;  %v303_v28 = vld [vmem:[%s2546_s6 + $0xa8] sm:$0xff]  ;;  %v304_v29 = vld [vmem:[%s2546_s6 + $0xb0] sm:$0xff]  ;;  %v305_v30 = vld [vmem:[%s2546_s6 + $0xb8] sm:$0xff]  ;;  %p2382_p3 = pnand %p2381_p2, %p2375_p13 }
  0x24   : > { %v306_v31 = vld [vmem:[%s2546_s6 + $0xc0] sm:$0xff]  ;;  %v307_v32 = vld [vmem:[%s2546_s6 + $0xc8] sm:$0xff]  ;;  %v308_v33 = vld [vmem:[%s2546_s6 + $0xd0] sm:$0xff] }
  0x25   : > { %v309_v34 = vld [vmem:[%s2546_s6 + $0xd8] sm:$0xff]  ;;  %v310_v35 = vld [vmem:[%s2546_s6 + $0xe0] sm:$0xff]  ;;  %v311_v36 = vld [vmem:[%s2546_s6 + $0xe8] sm:$0xff] }
  0x26   : > { %2152 = vmatmul.mubr.msk.f32.gmra.mrb[4].mxu0 %vm357_vm0, %v287_v12  ;;  %v312_v37 = vld [vmem:[%s2546_s6 + $0xf0] sm:$0xff]  ;;  %v313_v38 = vld [vmem:[%s2546_s6 + $0xf8] sm:$0xff]  ;;  %v314_v39 = vld [vmem:[%s2546_s6 + $0x100] sm:$0xff] }
  0x27   : > { %2154 = vmatprep.mubr.msk.f32.mxu0 %vm357_vm0, %v288_v13  ;;  %v315_v40 = vld [vmem:[%s2546_s6 + $0x108] sm:$0xff]  ;;  %v316_v41 = vld [vmem:[%s2546_s6 + $0x110] sm:$0xff]  ;;  %v317_v42 = vld [vmem:[%s2546_s6 + $0x118] sm:$0xff] }
  0x28   : > { %v318_v43 = vld [vmem:[%s2546_s6 + $0x120] sm:$0xff]  ;;  %v319_v44 = vld [vmem:[%s2546_s6 + $0x128] sm:$0xff]  ;;  %v320_v45 = vld [vmem:[%s2546_s6 + $0x130] sm:$0xff] }
  0x29   : > { %v321_v46 = vld [vmem:[%s2546_s6 + $0x138] sm:$0xff]  ;;  %v322_v47 = vld [vmem:[%s2546_s6 + $0x140] sm:$0xff]  ;;  %v323_v48 = vld [vmem:[%s2546_s6 + $0x148] sm:$0xff] }
  0x2a   : > { %2155 = vmatmul.mubr.msk.f32.gmra.mrb[6].mxu0 %vm357_vm0, %v289_v14  ;;  %v324_v49 = vld [vmem:[%s2546_s6 + $0x150] sm:$0xff]  ;;  %v325_v50 = vld [vmem:[%s2546_s6 + $0x158] sm:$0xff]  ;;  %v326_v51 = vld [vmem:[%s2546_s6 + $0x160] sm:$0xff] }
  0x2b   : > { %2157 = vmatprep.mubr.msk.f32.mxu0 %vm357_vm0, %v290_v15  ;;  %v327_v52 = vld [vmem:[%s2546_s6 + $0x168] sm:$0xff]  ;;  %v328_v53 = vld [vmem:[%s2546_s6 + $0x170] sm:$0xff]  ;;  %v329_v54 = vld [vmem:[%s2546_s6 + $0x178] sm:$0xff] }
  0x2c   : > { %v330_v55 = vld [vmem:[%s2546_s6 + $0x180] sm:$0xff]  ;;  %v331_v56 = vld [vmem:[%s2546_s6 + $0x188] sm:$0xff]  ;;  %v332_v57 = vld [vmem:[%s2546_s6 + $0x190] sm:$0xff] }
  0x2d   : > { %v333_v58 = vld [vmem:[%s2546_s6 + $0x198] sm:$0xff]  ;;  %v334_v59 = vld [vmem:[%s2546_s6 + $0x1a0] sm:$0xff]  ;;  %v335_v60 = vld [vmem:[%s2546_s6 + $0x1a8] sm:$0xff] }
  0x2e   : > { %2158 = vmatmul.mubr.msk.f32.gmra.mrb[8].mxu0 %vm357_vm0, %v291_v16  ;;  %v336_v61 = vld [vmem:[%s2546_s6 + $0x1b0] sm:$0xff]  ;;  %v337_v62 = vld [vmem:[%s2546_s6 + $0x1b8] sm:$0xff]  ;;  %v338_v63 = vld [vmem:[%s2546_s6 + $0x1c0] sm:$0xff] }
  0x2f   : > { %2160 = vmatprep.mubr.msk.f32.mxu0 %vm357_vm0, %v292_v17  ;;  %v339_v0 = vld [vmem:[%s2546_s6 + $0x1c8] sm:$0xff]  ;;  %v340_v1 = vld [vmem:[%s2546_s6 + $0x1d0] sm:$0xff]  ;;  %v341_v2 = vld [vmem:[%s2546_s6 + $0x1d8] sm:$0xff] }
  0x30   : > { %v342_v3 = vld [vmem:[%s2546_s6 + $0x1e0] sm:$0xff]  ;;  %v343_v4 = vld [vmem:[%s2546_s6 + $0x1e8] sm:$0xff]  ;;  %v344_v5 = vld [vmem:[%s2546_s6 + $0x1f0] sm:$0xff] }
  0x31   : > { %v345_v6 = vld [vmem:[%s2546_s6 + $0x1f8] sm:$0xff]  ;;  %v2679_v7 = vld [vmem:[%s3280_s3] sm:$0xff]  ;;  %s3235_s6 = scalar_lea.hbm %s3284_s7, %s2536_s20 }
  0x32   : > { %2161 = vmatmul.mubr.msk.f32.gmra.mrb[10].mxu0 %vm357_vm0, %v293_v18  ;;  %2041 = vmatprep.mubr.f32.mxu1 %v2679_v7  ;;  %v2686_v8 = vld [vmem:[%s3279_s2] ss:$0 sm:$0xff] }
  0x33   : > { %2163 = vmatprep.mubr.msk.f32.mxu0 %vm357_vm0, %v294_v19 }
  0x36   : > { %2164 = vmatmul.mubr.msk.f32.gmra.mrb[12].mxu0 %vm357_vm0, %v295_v20 }
  0x37   : > { %2166 = vmatprep.mubr.msk.f32.mxu0 %vm357_vm0, %v296_v21 }
  0x3a   : > { %2167 = vmatmul.mubr.msk.f32.gmra.mrb[14].mxu0 %vm357_vm0, %v297_v22 }
  0x3b   : > { %2169 = vmatprep.mubr.msk.f32.mxu0 %vm357_vm0, %v298_v23 }
  0x3e   : > { %2170 = vmatmul.mubr.msk.f32.gmra.mrb[16].mxu0 %vm357_vm0, %v299_v24 }
  0x3f   : > { %2172 = vmatprep.mubr.msk.f32.mxu0 %vm357_vm0, %v300_v25 }
  0x42   : > { %2173 = vmatmul.mubr.msk.f32.gmra.mrb[18].mxu0 %vm357_vm0, %v301_v26 }
  0x43   : > { %2175 = vmatprep.mubr.msk.f32.mxu0 %vm357_vm0, %v302_v27 }
  0x46   : > { %2176 = vmatmul.mubr.msk.f32.gmra.mrb[20].mxu0 %vm357_vm0, %v303_v28 }
  0x47   : > { %2178 = vmatprep.mubr.msk.f32.mxu0 %vm357_vm0, %v304_v29 }
  0x4a   : > { %2179 = vmatmul.mubr.msk.f32.gmra.mrb[22].mxu0 %vm357_vm0, %v305_v30 }
  0x4b   : > { %2181 = vmatprep.mubr.msk.f32.mxu0 %vm357_vm0, %v306_v31 }
  0x4e   : > { %2182 = vmatmul.mubr.msk.f32.gmra.mrb[24].mxu0 %vm357_vm0, %v307_v32 }
  0x4f   : > { %2184 = vmatprep.mubr.msk.f32.mxu0 %vm357_vm0, %v308_v33 }
  0x52   : > { %2185 = vmatmul.mubr.msk.f32.gmra.mrb[26].mxu0 %vm357_vm0, %v309_v34 }
  0x53   : > { %2187 = vmatprep.mubr.msk.f32.mxu0 %vm357_vm0, %v310_v35 }
  0x56   : > { %2188 = vmatmul.mubr.msk.f32.gmra.mrb[28].mxu0 %vm357_vm0, %v311_v36 }
  0x57   : > { %2190 = vmatprep.mubr.msk.f32.mxu0 %vm357_vm0, %v312_v37 }
  0x5a   : > { %2191 = vmatmul.mubr.msk.f32.gmra.mrb[30].mxu0 %vm357_vm0, %v313_v38 }
  0x5b   : > { %2193 = vmatprep.mubr.msk.f32.mxu0 %vm357_vm0, %v314_v39 }
  0x5e   : > { %2194 = vmatmul.mubr.msk.f32.gmra.mrb[32].mxu0 %vm357_vm0, %v315_v40 }
  0x5f   : > { %2196 = vmatprep.mubr.msk.f32.mxu0 %vm357_vm0, %v316_v41 }
  0x62   : > { %2197 = vmatmul.mubr.msk.f32.gmra.mrb[34].mxu0 %vm357_vm0, %v317_v42 }
  0x63   : > { %2199 = vmatprep.mubr.msk.f32.mxu0 %vm357_vm0, %v318_v43 }
  0x66   : > { %2200 = vmatmul.mubr.msk.f32.gmra.mrb[36].mxu0 %vm357_vm0, %v319_v44 }
  0x67   : > { %2202 = vmatprep.mubr.msk.f32.mxu0 %vm357_vm0, %v320_v45 }
  0x6a   : > { %2203 = vmatmul.mubr.msk.f32.gmra.mrb[38].mxu0 %vm357_vm0, %v321_v46 }
  0x6b   : > { %2205 = vmatprep.mubr.msk.f32.mxu0 %vm357_vm0, %v322_v47 }
  0x6e   : > { %2206 = vmatmul.mubr.msk.f32.gmra.mrb[40].mxu0 %vm357_vm0, %v323_v48 }
  0x6f   : > { %2208 = vmatprep.mubr.msk.f32.mxu0 %vm357_vm0, %v324_v49 }
  0x72   : > { %2209 = vmatmul.mubr.msk.f32.gmra.mrb[42].mxu0 %vm357_vm0, %v325_v50 }
  0x73   : > { %2211 = vmatprep.mubr.msk.f32.mxu0 %vm357_vm0, %v326_v51 }
  0x76   : > { %2212 = vmatmul.mubr.msk.f32.gmra.mrb[44].mxu0 %vm357_vm0, %v327_v52 }
  0x77   : > { %2214 = vmatprep.mubr.msk.f32.mxu0 %vm357_vm0, %v328_v53 }
  0x7a   : > { %2215 = vmatmul.mubr.msk.f32.gmra.mrb[46].mxu0 %vm357_vm0, %v329_v54 }
  0x7b   : > { %2217 = vmatprep.mubr.msk.f32.mxu0 %vm357_vm0, %v330_v55 }
  0x7e   : > { %2218 = vmatmul.mubr.msk.f32.gmra.mrb[48].mxu0 %vm357_vm0, %v331_v56 }
  0x7f   : > { %2220 = vmatprep.mubr.msk.f32.mxu0 %vm357_vm0, %v332_v57 }
  0x82   : > { %2221 = vmatmul.mubr.msk.f32.gmra.mrb[50].mxu0 %vm357_vm0, %v333_v58 }
  0x83   : > { %2223 = vmatprep.mubr.msk.f32.mxu0 %vm357_vm0, %v334_v59 }
  0x86   : > { %2224 = vmatmul.mubr.msk.f32.gmra.mrb[52].mxu0 %vm357_vm0, %v335_v60 }
  0x87   : > { %2226 = vmatprep.mubr.msk.f32.mxu0 %vm357_vm0, %v336_v61 }
  0x8a   : > { %2227 = vmatmul.mubr.msk.f32.gmra.mrb[54].mxu0 %vm357_vm0, %v337_v62 }
  0x8b   : > { %2229 = vmatprep.mubr.msk.f32.mxu0 %vm357_vm0, %v338_v63 }
  0x8e   : > { %2230 = vmatmul.mubr.msk.f32.gmra.mrb[56].mxu0 %vm357_vm0, %v339_v0 }
  0x8f   : > { %2232 = vmatprep.mubr.msk.f32.mxu0 %vm357_vm0, %v340_v1 }
  0x92   : > { %2233 = vmatmul.mubr.msk.f32.gmra.mrb[58].mxu0 %vm357_vm0, %v341_v2 }
  0x93   : > { %2235 = vmatprep.mubr.msk.f32.mxu0 %vm357_vm0, %v342_v3 }
  0x96   : > { %2236 = vmatmul.mubr.msk.f32.gmra.mrb[60].mxu0 %vm357_vm0, %v343_v4 }
  0x97   : > { %2238 = vmatprep.mubr.msk.f32.mxu0 %vm357_vm0, %v344_v5 }
  0x9a   : > { %2239 = vmatmul.mubr.msk.f32.gmra.mrb[62].mxu0 %vm357_vm0, %v345_v6 }
  0x9b   : > { %2105 = vmatprep.mubr.f32.mxu0 %v2679_v7 }
  0xf1   : > { %v2147_v9 = vpop.f32.mrb[0].mxu0 }
  0xf2   : > { %v622_v10 = vadd.f32 %v2147_v9, %v2686_v8  ;;  %v616_v11 = vpop.f32.mrb[1].mxu0 }
  0xf3   : > { %v617_v12 = vadd.f32 %v2686_v8, %v616_v11 }
  0xf4   : > { %v936_v13 = vmax.f32 %v622_v10, 0.0 }
  0xf5   : > { %v935_v14 = vmax.f32 %v617_v12, 0.0  ;;  %v2150_v15 = vpop.f32.mrb[2].mxu0 }
  0xf6   : > { %v632_v16 = vadd.f32 %v2150_v15, %v2686_v8  ;;  %v626_v17 = vpop.f32.mrb[3].mxu0 }
  0xf7   : > { %v627_v18 = vadd.f32 %v2686_v8, %v626_v17  ;;  %v2251_v19 = vpack.c.bf16 %v936_v13, %v935_v14 }
  0xf8   : > { %v938_v20 = vmax.f32 %v632_v16, 0.0 }
  0xf9   : > { %v937_v21 = vmax.f32 %v627_v18, 0.0  ;;  %v2153_v22 = vpop.f32.mrb[4].mxu0 }
  0xfa   : > { %v642_v23 = vadd.f32 %v2153_v22, %v2686_v8  ;;  %v636_v24 = vpop.f32.mrb[5].mxu0 }
  0xfb   : > { %v2693_v25 = vpack.c.bf16 %v938_v20, %v937_v21  ;;  %v637_v26 = vadd.f32 %v2686_v8, %v636_v24 }
  0xfc   : > { %v940_v27 = vmax.f32 %v642_v23, 0.0 }
  0xfd   : > { %v939_v28 = vmax.f32 %v637_v26, 0.0  ;;  %v2156_v29 = vpop.f32.mrb[6].mxu0 }
  0xfe   : > { %v652_v30 = vadd.f32 %v2156_v29, %v2686_v8  ;;  %v646_v31 = vpop.f32.mrb[7].mxu0  ;;  %v1015_v29 = vld [vmem:[%s3281_s4] sm:$0xff] }
  0xff   : > { %v2697_v32 = vpack.c.bf16 %v940_v27, %v939_v28  ;;  %v647_v33 = vadd.f32 %v2686_v8, %v646_v31  ;;  %v2436_v28 = vmov 0  }
 0x100   : > { %v942_v34 = vmax.f32 %v652_v30, 0.0  ;;  %2370 = vset.pattern.permute.xlu0 %v2436_v28  ;;  %2371 = vset.pattern.permute.xlu1 %v2436_v28  ;;  %v1501_v28 = vld [vmem:[%s3282_s5 + $0x20] sm:$0xff] }
 0x101   : > { %v941_v35 = vmax.f32 %v647_v33, 0.0  ;;  %v2159_v36 = vpop.f32.mrb[8].mxu0  ;;  %1033 = vperm.xlu0 %2370, %v1015_v29  }
 0x102   : > { %v662_v37 = vadd.f32 %v2159_v36, %v2686_v8  ;;  %v656_v38 = vpop.f32.mrb[9].mxu0 }
 0x103   : > { %v2701_v39 = vpack.c.bf16 %v942_v34, %v941_v35  ;;  %v657_v40 = vadd.f32 %v2686_v8, %v656_v38 }
 0x104   : > { %v944_v41 = vmax.f32 %v662_v37, 0.0  ;;  %v1016_v37 = vld [vmem:[%s3281_s4 + $0x8] sm:$0xff] }
 0x105   : > { %v943_v42 = vmax.f32 %v657_v40, 0.0  ;;  %v2162_v43 = vpop.f32.mrb[10].mxu0  ;;  %1038 = vperm.xlu0 %2370, %v1016_v37  }
 0x106   : > { %v672_v44 = vadd.f32 %v2162_v43, %v2686_v8  ;;  %v666_v45 = vpop.f32.mrb[11].mxu0 }
 0x107   : > { %v2705_v46 = vpack.c.bf16 %v944_v41, %v943_v42  ;;  %v667_v47 = vadd.f32 %v2686_v8, %v666_v45  ;;  %v1017_v42 = vld [vmem:[%s3281_s4 + $0x10] sm:$0xff] }
 0x108   : > { %v946_v48 = vmax.f32 %v672_v44, 0.0  ;;  %1043 = vperm.xlu1 %2371, %v1017_v42  }
 0x109   : > { %v945_v49 = vmax.f32 %v667_v47, 0.0  ;;  %v2165_v50 = vpop.f32.mrb[12].mxu0  ;;  %v1497_v47 = vld [vmem:[%s3282_s5] sm:$0xff] }
 0x10a   : > { %v682_v51 = vadd.f32 %v2165_v50, %v2686_v8  ;;  %v676_v52 = vpop.f32.mrb[13].mxu0  ;;  %1515 = vperm.xlu0 %2370, %v1497_v47   ;;  %v1025_v47 = vld [vmem:[%s3281_s4 + $0x50] sm:$0xff] }
 0x10b   : > { %v2709_v53 = vpack.c.bf16 %v946_v48, %v945_v49  ;;  %v677_v54 = vadd.f32 %v2686_v8, %v676_v52 }
 0x10c   : > { %v948_v55 = vmax.f32 %v682_v51, 0.0  ;;  %v1018_v51 = vld [vmem:[%s3281_s4 + $0x18] sm:$0xff] }
 0x10d   : > { %v947_v56 = vmax.f32 %v677_v54, 0.0  ;;  %v2168_v57 = vpop.f32.mrb[14].mxu0  ;;  %1048 = vperm.xlu1 %2371, %v1018_v51  }
 0x10e   : > { %v692_v58 = vadd.f32 %v2168_v57, %v2686_v8  ;;  %v686_v59 = vpop.f32.mrb[15].mxu0  ;;  %v1019_v57 = vld [vmem:[%s3281_s4 + $0x20] sm:$0xff] }
 0x10f   : > { %v2713_v60 = vpack.c.bf16 %v948_v55, %v947_v56  ;;  %v687_v61 = vadd.f32 %v2686_v8, %v686_v59  ;;  %1053 = vperm.xlu0 %2370, %v1019_v57   ;;  %v1026_v57 = vld [vmem:[%s3281_s4 + $0x58] sm:$0xff] }
 0x110   : > { %v950_v62 = vmax.f32 %v692_v58, 0.0 }
 0x111   : > { %v949_v63 = vmax.f32 %v687_v61, 0.0  ;;  %v2171_v0 = vpop.f32.mrb[16].mxu0 }
 0x112   : > { %v702_v1 = vadd.f32 %v2171_v0, %v2686_v8  ;;  %v696_v2 = vpop.f32.mrb[17].mxu0 }
 0x113   : > { %v2717_v3 = vpack.c.bf16 %v950_v62, %v949_v63  ;;  %v697_v4 = vadd.f32 %v2686_v8, %v696_v2  ;;  %v1498_v62 = vld [vmem:[%s3282_s5 + $0x8] sm:$0xff] }
 0x114   : > { %v952_v5 = vmax.f32 %v702_v1, 0.0  ;;  %1520 = vperm.xlu1 %2371, %v1498_v62   ;;  %v1020_v2 = vld [vmem:[%s3281_s4 + $0x28] sm:$0xff]  ;;  %v1505_v62 = vld [vmem:[%s3282_s5 + $0x40] sm:$0xff] }
 0x115   : > { %v951_v6 = vmax.f32 %v697_v4, 0.0  ;;  %v2174_v9 = vpop.f32.mrb[18].mxu0  ;;  %1058 = vperm.xlu0 %2370, %v1020_v2  }
 0x116   : > { %v712_v10 = vadd.f32 %v2174_v9, %v2686_v8  ;;  %v706_v11 = vpop.f32.mrb[19].mxu0  ;;  %v1499_v9 = vld [vmem:[%s3282_s5 + $0x10] sm:$0xff] }
 0x117   : > { %v707_v12 = vadd.f32 %v2686_v8, %v706_v11  ;;  %v2249_v13 = vpack.c.bf16 %v952_v5, %v951_v6 }
 0x118   : > { %v954_v14 = vmax.f32 %v712_v10, 0.0  ;;  %1525 = vperm.xlu1 %2371, %v1499_v9   ;;  %v1506_v9 = vld [vmem:[%s3282_s5 + $0x48] sm:$0xff] }
 0x119   : > { %v953_v15 = vmax.f32 %v707_v12, 0.0  ;;  %v2177_v16 = vpop.f32.mrb[20].mxu0  ;;  %2250 = vmatprep.subr.bf16.mxu1 %v2249_v13 }
 0x11a   : > { %v722_v17 = vadd.f32 %v2177_v16, %v2686_v8  ;;  %v716_v18 = vpop.f32.mrb[21].mxu0  ;;  %2252 = vmatpush3.bf16.xpose.msra.mxu1 %v2251_v19 }
 0x11b   : > { %v2253_v20 = vpack.c.bf16 %v954_v14, %v953_v15  ;;  %v717_v21 = vadd.f32 %v2686_v8, %v716_v18  ;;  %v1021_v14 = vld [vmem:[%s3281_s4 + $0x30] sm:$0xff]  ;;  %v1500_v18 = vld [vmem:[%s3282_s5 + $0x18] sm:$0xff] }
 0x11c   : > { %v956_v22 = vmax.f32 %v722_v17, 0.0  ;;  %1063 = vperm.xlu0 %2370, %v1021_v14   ;;  %1530 = vperm.xlu1 %2371, %v1500_v18   ;;  %v1507_v18 = vld [vmem:[%s3282_s5 + $0x50] sm:$0xff] }
 0x11d   : > { %v955_v23 = vmax.f32 %v717_v21, 0.0  ;;  %v2180_v24 = vpop.f32.mrb[22].mxu0  ;;  %2254 = vmatprep.subr.bf16.mxu1 %v2253_v20 }
 0x11e   : > { %v732_v26 = vadd.f32 %v2180_v24, %v2686_v8  ;;  %v726_v27 = vpop.f32.mrb[23].mxu0 }
 0x11f   : > { %v2257_v30 = vpack.c.bf16 %v956_v22, %v955_v23  ;;  %v727_v19 = vadd.f32 %v2686_v8, %v726_v27  ;;  %v1022_v23 = vld [vmem:[%s3281_s4 + $0x38] sm:$0xff] }
 0x120   : > { %v958_v31 = vmax.f32 %v732_v26, 0.0  ;;  %1068 = vperm.xlu0 %2370, %v1022_v23   ;;  %1535 = vperm.xlu1 %2371, %v1501_v28   ;;  %v1508_v28 = vld [vmem:[%s3282_s5 + $0x58] sm:$0xff] }
 0x121   : > { %v957_v33 = vmax.f32 %v727_v19, 0.0  ;;  %v2183_v34 = vpop.f32.mrb[24].mxu0 }
 0x122   : > { %v742_v35 = vadd.f32 %v2183_v34, %v2686_v8  ;;  %v736_v36 = vpop.f32.mrb[25].mxu0  ;;  %2256 = vmatpush3.bf16.xpose.msra.mxu1 %v2693_v25  ;;  %v1023_v34 = vld [vmem:[%s3281_s4 + $0x40] sm:$0xff] }
 0x123   : > { %v2261_v38 = vpack.c.bf16 %v958_v31, %v957_v33  ;;  %v737_v40 = vadd.f32 %v2686_v8, %v736_v36  ;;  %2258 = vmatprep.subr.bf16.mxu1 %v2257_v30  ;;  %v1502_v33 = vld [vmem:[%s3282_s5 + $0x28] sm:$0xff] }
 0x124   : > { %v960_v41 = vmax.f32 %v742_v35, 0.0  ;;  %1073 = vperm.xlu0 %2370, %v1023_v34   ;;  %1540 = vperm.xlu1 %2371, %v1502_v33  }
 0x125   : > { %v959_v43 = vmax.f32 %v737_v40, 0.0  ;;  %v2186_v44 = vpop.f32.mrb[26].mxu0 }
 0x126   : > { %v752_v45 = vadd.f32 %v2186_v44, %v2686_v8  ;;  %v746_v25 = vpop.f32.mrb[27].mxu0 }
 0x127   : > { %v2265_v48 = vpack.c.bf16 %v960_v41, %v959_v43  ;;  %v747_v49 = vadd.f32 %v2686_v8, %v746_v25  ;;  %v1503_v43 = vld [vmem:[%s3282_s5 + $0x30] sm:$0xff] }
 0x128   : > { %v962_v50 = vmax.f32 %v752_v45, 0.0  ;;  %1545 = vperm.xlu1 %2371, %v1503_v43   ;;  %v1509_v43 = vld [vmem:[%s3282_s5 + $0x60] sm:$0xff] }
 0x129   : > { %v961_v52 = vmax.f32 %v747_v49, 0.0  ;;  %v2189_v54 = vpop.f32.mrb[28].mxu0 }
 0x12a   : > { %v762_v55 = vadd.f32 %v2189_v54, %v2686_v8  ;;  %v756_v56 = vpop.f32.mrb[29].mxu0  ;;  %2260 = vmatpush3.bf16.xpose.msra.mxu1 %v2697_v32 }
 0x12b   : > { %v2269_v58 = vpack.c.bf16 %v962_v50, %v961_v52  ;;  %v757_v59 = vadd.f32 %v2686_v8, %v756_v56  ;;  %2262 = vmatprep.subr.bf16.mxu1 %v2261_v38  ;;  %v1024_v38 = vld [vmem:[%s3281_s4 + $0x48] sm:$0xff]  ;;  %v1504_v52 = vld [vmem:[%s3282_s5 + $0x38] sm:$0xff] }
 0x12c   : > { %v964_v61 = vmax.f32 %v762_v55, 0.0  ;;  %1078 = vperm.xlu0 %2370, %v1024_v38   ;;  %1550 = vperm.xlu1 %2371, %v1504_v52  }
 0x12d   : > { %v963_v63 = vmax.f32 %v757_v59, 0.0  ;;  %v2192_v0 = vpop.f32.mrb[30].mxu0 }
 0x12e   : > { %v772_v1 = vadd.f32 %v2192_v0, %v2686_v8  ;;  %v766_v32 = vpop.f32.mrb[31].mxu0 }
 0x12f   : > { %v2759_v4 = vpack.c.bf16 %v964_v61, %v963_v63  ;;  %v767_v5 = vadd.f32 %v2686_v8, %v766_v32  ;;  %v1027_v32 = vld [vmem:[%s3281_s4 + $0x60] sm:$0xff] }
 0x130   : > { %v966_v6 = vmax.f32 %v772_v1, 0.0  ;;  %1083 = vperm.xlu0 %2370, %v1025_v47   ;;  %1555 = vperm.xlu1 %2371, %v1505_v62  }
 0x131   : > { %v965_v10 = vmax.f32 %v767_v5, 0.0  ;;  %v2195_v11 = vpop.f32.mrb[32].mxu0 }
 0x132   : > { %v782_v12 = vadd.f32 %v2195_v11, %v2686_v8  ;;  %v776_v13 = vpop.f32.mrb[33].mxu0  ;;  %2264 = vmatpush3.bf16.xpose.msra.mxu1 %v2701_v39 }
 0x133   : > { %v2770_v15 = vpack.c.bf16 %v966_v6, %v965_v10  ;;  %v777_v16 = vadd.f32 %v2686_v8, %v776_v13  ;;  %2266 = vmatprep.subr.bf16.mxu1 %v2265_v48  ;;  %v1028_v13 = vld [vmem:[%s3281_s4 + $0x68] sm:$0xff] }
 0x134   : > { %v968_v17 = vmax.f32 %v782_v12, 0.0  ;;  %1088 = vperm.xlu0 %2370, %v1026_v57   ;;  %1560 = vperm.xlu1 %2371, %v1506_v9  }
 0x135   : > { %v967_v20 = vmax.f32 %v777_v16, 0.0  ;;  %v2198_v21 = vpop.f32.mrb[34].mxu0 }
 0x136   : > { %v792_v39 = vadd.f32 %v2198_v21, %v2686_v8  ;;  %v786_v22 = vpop.f32.mrb[35].mxu0 }
 0x137   : > { %v2780_v24 = vpack.c.bf16 %v968_v17, %v967_v20  ;;  %v787_v26 = vadd.f32 %v2686_v8, %v786_v22 }
 0x138   : > { %v970_v27 = vmax.f32 %v792_v39, 0.0  ;;  %1093 = vperm.xlu0 %2370, %v1027_v32   ;;  %v1029_v39 = vld [vmem:[%s3281_s4 + $0x70] sm:$0xff]  ;;  %1565 = vperm.xlu1 %2371, %v1507_v18   ;;  %v2922_v18 = vld [vmem:[%s3280_s3 + $0x28] sm:$0xff] }
 0x139   : > { %v969_v29 = vmax.f32 %v787_v26, 0.0  ;;  %v2201_v30 = vpop.f32.mrb[36].mxu0 }
 0x13a   : > { %v802_v19 = vadd.f32 %v2201_v30, %v2686_v8  ;;  %v796_v31 = vpop.f32.mrb[37].mxu0  ;;  %2268 = vmatpush3.bf16.xpose.msra.mxu1 %v2705_v46 }
 0x13b   : > { %v2794_v35 = vpack.c.bf16 %v970_v27, %v969_v29  ;;  %v797_v36 = vadd.f32 %v2686_v8, %v796_v31  ;;  %2270 = vmatprep.subr.bf16.mxu1 %v2269_v58  ;;  %v1030_v31 = vld [vmem:[%s3281_s4 + $0x78] sm:$0xff] }
 0x13c   : > { %v972_v37 = vmax.f32 %v802_v19, 0.0  ;;  %1098 = vperm.xlu0 %2370, %v1028_v13   ;;  %1570 = vperm.xlu1 %2371, %v1508_v28  }
 0x13d   : > { %v971_v46 = vmax.f32 %v797_v36, 0.0  ;;  %v2204_v40 = vpop.f32.mrb[38].mxu0 }
 0x13e   : > { %v812_v41 = vadd.f32 %v2204_v40, %v2686_v8  ;;  %v806_v42 = vpop.f32.mrb[39].mxu0  ;;  %v2870_v40 = vld [vmem:[%s3280_s3 + $0x8] sm:$0xff] }
 0x13f   : > { %v2804_v44 = vpack.c.bf16 %v972_v37, %v971_v46  ;;  %v807_v45 = vadd.f32 %v2686_v8, %v806_v42 }
 0x140   : > { %v974_v25 = vmax.f32 %v812_v41, 0.0  ;;  %1103 = vperm.xlu0 %2370, %v1029_v39   ;;  %1575 = vperm.xlu1 %2371, %v1509_v43   ;;  %v1014_v43 = vld [vmem:[%s3280_s3 + $0x78] sm:$0xff] }
 0x141   : > { %v973_v48 = vmax.f32 %v807_v45, 0.0  ;;  %v2207_v49 = vpop.f32.mrb[40].mxu0  ;;  %v1511_v45 = vld [vmem:[%s3282_s5 + $0x70] sm:$0xff] }
 0x142   : > { %v822_v50 = vadd.f32 %v2207_v49, %v2686_v8  ;;  %v816_v51 = vpop.f32.mrb[41].mxu0  ;;  %2272 = vmatpush3.bf16.xpose.msra.mxu1 %v2709_v53 }
 0x143   : > { %v2815_v54 = vpack.c.bf16 %v974_v25, %v973_v48  ;;  %v817_v55 = vadd.f32 %v2686_v8, %v816_v51  ;;  %2274 = vmatprep.subr.bf16.mxu1 %v2759_v4  ;;  %v2887_v51 = vld [vmem:[%s3280_s3 + $0x10] sm:$0xff] }
 0x144   : > { %v976_v56 = vmax.f32 %v822_v50, 0.0  ;;  %1108 = vperm.xlu0 %2370, %v1030_v31  }
 0x145   : > { %v975_v58 = vmax.f32 %v817_v55, 0.0  ;;  %v2210_v59 = vpop.f32.mrb[42].mxu0 }
 0x146   : > { %v832_v53 = vadd.f32 %v2210_v59, %v2686_v8  ;;  %v826_v61 = vpop.f32.mrb[43].mxu0 }
 0x147   : > { %v2826_v63 = vpack.c.bf16 %v976_v56, %v975_v58  ;;  %v827_v0 = vadd.f32 %v2686_v8, %v826_v61  ;;  %v1741_v56 = vld [vmem:[#allocation2] sm:$0x1] }
 0x148   : > { %v978_v1 = vmax.f32 %v832_v53, 0.0  ;;  %1585 = vperm.xlu0 %2370, %v1511_v45  }
 0x149   : > { %v977_v2 = vmax.f32 %v827_v0, 0.0  ;;  %v2213_v4 = vpop.f32.mrb[44].mxu0  ;;  %v2899_v0 = vld [vmem:[%s3280_s3 + $0x18] sm:$0xff] }
 0x14a   : > { %v842_v5 = vadd.f32 %v2213_v4, %v2686_v8  ;;  %v836_v6 = vpop.f32.mrb[45].mxu0  ;;  %2276 = vmatpush3.bf16.xpose.msra.mxu1 %v2713_v60  ;;  %v1512_v4 = vld [vmem:[%s3282_s5 + $0x78] sm:$0xff] }
 0x14b   : > { %v2837_v10 = vpack.c.bf16 %v978_v1, %v977_v2  ;;  %v837_v11 = vadd.f32 %v2686_v8, %v836_v6  ;;  %2278 = vmatprep.subr.bf16.mxu1 %v2770_v15 }
 0x14c   : > { %v980_v12 = vmax.f32 %v842_v5, 0.0  ;;  %1744 = vperm.xlu0 %2370, %v1741_v56  }
 0x14d   : > { %v979_v14 = vmax.f32 %v837_v11, 0.0  ;;  %v2216_v16 = vpop.f32.mrb[46].mxu0  ;;  %v2913_v11 = vld [vmem:[%s3280_s3 + $0x20] sm:$0xff] }
 0x14e   : > { %v852_v60 = vadd.f32 %v2216_v16, %v2686_v8  ;;  %v846_v17 = vpop.f32.mrb[47].mxu0 }
 0x14f   : > { %v2848_v20 = vpack.c.bf16 %v980_v12, %v979_v14  ;;  %v847_v15 = vadd.f32 %v2686_v8, %v846_v17 }
 0x150   : > { %v982_v21 = vmax.f32 %v852_v60, 0.0 }
 0x151   : > { %v981_v22 = vmax.f32 %v847_v15, 0.0  ;;  %v2219_v23 = vpop.f32.mrb[48].mxu0 }
 0x152   : > { %v862_v26 = vadd.f32 %v2219_v23, %v2686_v8  ;;  %v856_v27 = vpop.f32.mrb[49].mxu0  ;;  %2280 = vmatpush3.bf16.xpose.msra.mxu1 %v2717_v3 }
 0x153   : > { %v2859_v29 = vpack.c.bf16 %v982_v21, %v981_v22  ;;  %v857_v30 = vadd.f32 %v2686_v8, %v856_v27  ;;  %v2933_v27 = vld [vmem:[%s3280_s3 + $0x30] sm:$0xff] }
 0x154   : > { %v984_v19 = vmax.f32 %v862_v26, 0.0 }
 0x155   : > { %v983_v33 = vmax.f32 %v857_v30, 0.0  ;;  %v2222_v34 = vpop.f32.mrb[50].mxu0 }
 0x156   : > { %v872_v36 = vadd.f32 %v2222_v34, %v2686_v8  ;;  %v866_v3 = vpop.f32.mrb[51].mxu0 }
 0x157   : > { %v2281_v37 = vpack.c.bf16 %v984_v19, %v983_v33  ;;  %v867_v38 = vadd.f32 %v2686_v8, %v866_v3  ;;  %v1006_v3 = vld [vmem:[%s3280_s3 + $0x38] sm:$0xff] }
 0x158   : > { %v986_v46 = vmax.f32 %v872_v36, 0.0 }
 0x159   : > { %2282 = vmatprep.subr.bf16.mxu0 %v2281_v37  ;;  %2313 = vmatprep.subr.bf16.mxu1 %v2281_v37  ;;  %v985_v41 = vmax.f32 %v867_v38, 0.0  ;;  %v2225_v42 = vpop.f32.mrb[52].mxu0 }
 0x15a   : > { %2042 = vmatmul.mubr.f32.vlgmr.msra.gmra.mrb[0].mxu1 %v2679_v7  ;;  %2284 = vmatpush3.bf16.xpose.msra.mxu0 %v2780_v24  ;;  %v882_v25 = vadd.f32 %v2225_v42, %v2686_v8  ;;  %v876_v47 = vpop.f32.mrb[53].mxu0  ;;  %v1012_v42 = vld [vmem:[%s3280_s3 + $0x68] sm:$0xff] }
 0x15b   : > { %v2285_v48 = vpack.c.bf16 %v986_v46, %v985_v41  ;;  %2321 = vmatpush3.bf16.xpose.msra.mxu1 %v2780_v24  ;;  %v877_v49 = vadd.f32 %v2686_v8, %v876_v47  ;;  %2043 = vmatprep.mubr.f32.mxu1 %v2870_v40  ;;  %v1510_v24 = vld [vmem:[%s3282_s5 + $0x68] sm:$0xff]  ;;  %v1010_v41 = vld [vmem:[%s3280_s3 + $0x58] sm:$0xff] }
 0x15c   : > { %v988_v50 = vmax.f32 %v882_v25, 0.0  ;;  %1580 = vperm.xlu1 %2371, %v1510_v24   ;;  %v1008_v46 = vld [vmem:[%s3280_s3 + $0x48] sm:$0xff] }
 0x15d   : > { %2286 = vmatprep.subr.bf16.mxu0 %v2285_v48  ;;  %2314 = vmatprep.subr.bf16.mxu1 %v2285_v48  ;;  %v987_v52 = vmax.f32 %v877_v49, 0.0  ;;  %v2228_v55 = vpop.f32.mrb[54].mxu0 }
 0x15e   : > { %2044 = vmatmul.mubr.f32.gmra.mrb[2].mxu1 %v2870_v40  ;;  %v892_v57 = vadd.f32 %v2228_v55, %v2686_v8  ;;  %v886_v58 = vpop.f32.mrb[55].mxu0 }
 0x15f   : > { %v2289_v59 = vpack.c.bf16 %v988_v50, %v987_v52  ;;  %v887_v53 = vadd.f32 %v2686_v8, %v886_v58  ;;  %2045 = vmatprep.mubr.f32.mxu1 %v2887_v51 }
 0x160   : > { %v990_v61 = vmax.f32 %v892_v57, 0.0  ;;  %1590 = vperm.xlu1 %2371, %v1512_v4  }
 0x161   : > { %v989_v62 = vmax.f32 %v887_v53, 0.0  ;;  %v2231_v1 = vpop.f32.mrb[56].mxu0 }
 0x162   : > { %2288 = vmatpush3.bf16.xpose.msra.mxu0 %v2794_v35  ;;  %2046 = vmatmul.mubr.f32.gmra.mrb[4].mxu1 %v2887_v51  ;;  %v902_v32 = vadd.f32 %v2231_v1, %v2686_v8  ;;  %v896_v2 = vpop.f32.mrb[57].mxu0 }
 0x163   : > { %2322 = vmatpush3.bf16.xpose.msra.mxu1 %v2794_v35  ;;  %2290 = vmatprep.subr.bf16.mxu0 %v2289_v59  ;;  %v2293_v5 = vpack.c.bf16 %v990_v61, %v989_v62  ;;  %v897_v6 = vadd.f32 %v2686_v8, %v896_v2 }
 0x164   : > { %2315 = vmatprep.subr.bf16.mxu1 %v2289_v59  ;;  %2047 = vmatprep.mubr.f32.mxu1 %v2899_v0  ;;  %v992_v9 = vmax.f32 %v902_v32, 0.0 }
 0x165   : > { %v991_v12 = vmax.f32 %v897_v6, 0.0  ;;  %v2234_v13 = vpop.f32.mrb[58].mxu0 }
 0x166   : > { %2048 = vmatmul.mubr.f32.gmra.mrb[6].mxu1 %v2899_v0  ;;  %v912_v35 = vadd.f32 %v2234_v13, %v2686_v8  ;;  %v906_v14 = vpop.f32.mrb[59].mxu0 }
 0x167   : > { %v2297_v16 = vpack.c.bf16 %v992_v9, %v991_v12  ;;  %2049 = vmatprep.mubr.f32.mxu1 %v2913_v11  ;;  %v907_v60 = vadd.f32 %v2686_v8, %v906_v14 }
 0x168   : > { %v994_v17 = vmax.f32 %v912_v35, 0.0 }
 0x169   : > { %v993_v15 = vmax.f32 %v907_v60, 0.0  ;;  %v2237_v21 = vpop.f32.mrb[60].mxu0 }
 0x16a   : > { %2292 = vmatpush3.bf16.xpose.msra.mxu0 %v2804_v44  ;;  %2050 = vmatmul.mubr.f32.gmra.mrb[8].mxu1 %v2913_v11  ;;  %v922_v39 = vadd.f32 %v2237_v21, %v2686_v8  ;;  %v916_v22 = vpop.f32.mrb[61].mxu0 }
 0x16b   : > { %2323 = vmatpush3.bf16.xpose.msra.mxu1 %v2804_v44  ;;  %2294 = vmatprep.subr.bf16.mxu0 %v2293_v5  ;;  %v2301_v23 = vpack.c.bf16 %v994_v17, %v993_v15  ;;  %v917_v26 = vadd.f32 %v2686_v8, %v916_v22 }
 0x16c   : > { %2316 = vmatprep.subr.bf16.mxu1 %v2293_v5  ;;  %2051 = vmatprep.mubr.f32.mxu1 %v2922_v18  ;;  %v996_v28 = vmax.f32 %v922_v39, 0.0 }
 0x16d   : > { %v995_v30 = vmax.f32 %v917_v26, 0.0  ;;  %v2240_v19 = vpop.f32.mrb[62].mxu0 }
 0x16e   : > { %2052 = vmatmul.mubr.f32.gmra.mrb[10].mxu1 %v2922_v18  ;;  %v932_v31 = vadd.f32 %v2240_v19, %v2686_v8  ;;  %v926_v44 = vpop.f32.mrb[63].mxu0 }
 0x16f   : > { %2053 = vmatprep.mubr.f32.mxu1 %v2933_v27  ;;  %v2305_v33 = vpack.c.bf16 %v996_v28, %v995_v30  ;;  %v927_v34 = vadd.f32 %v2686_v8, %v926_v44  ;;  %v1007_v8 = vld [vmem:[%s3280_s3 + $0x40] sm:$0xff] }
 0x170   : > { %v998_v36 = vmax.f32 %v932_v31, 0.0 }
 0x171   : > { %v997_v37 = vmax.f32 %v927_v34, 0.0 }
 0x172   : > { %2296 = vmatpush3.bf16.xpose.msra.mxu0 %v2815_v54  ;;  %2054 = vmatmul.mubr.f32.gmra.mrb[12].mxu1 %v2933_v27 }
 0x173   : > { %2324 = vmatpush3.bf16.xpose.msra.mxu1 %v2815_v54  ;;  %2298 = vmatprep.subr.bf16.mxu0 %v2297_v16  ;;  %v2309_v38 = vpack.c.bf16 %v998_v36, %v997_v37  ;;  %v1009_v54 = vld [vmem:[%s3280_s3 + $0x50] sm:$0xff] }
 0x174   : > { %2317 = vmatprep.subr.bf16.mxu1 %v2297_v16  ;;  %2055 = vmatprep.mubr.f32.mxu1 %v1006_v3 }
 0x176   : > { %2056 = vmatmul.mubr.f32.gmra.mrb[14].mxu1 %v1006_v3 }
 0x177   : > { %2057 = vmatprep.mubr.f32.mxu1 %v1007_v8 }
 0x17a   : > { %2300 = vmatpush3.bf16.xpose.msra.mxu0 %v2826_v63  ;;  %2058 = vmatmul.mubr.f32.gmra.mrb[16].mxu1 %v1007_v8 }
 0x17b   : > { %2325 = vmatpush3.bf16.xpose.msra.mxu1 %v2826_v63  ;;  %2302 = vmatprep.subr.bf16.mxu0 %v2301_v23  ;;  %v1011_v63 = vld [vmem:[%s3280_s3 + $0x60] sm:$0xff] }
 0x17c   : > { %2318 = vmatprep.subr.bf16.mxu1 %v2301_v23  ;;  %2059 = vmatprep.mubr.f32.mxu1 %v1008_v46 }
 0x17e   : > { %2060 = vmatmul.mubr.f32.gmra.mrb[18].mxu1 %v1008_v46 }
 0x17f   : > { %2061 = vmatprep.mubr.f32.mxu1 %v1009_v54 }
 0x182   : > { %2304 = vmatpush3.bf16.xpose.msra.mxu0 %v2837_v10  ;;  %2062 = vmatmul.mubr.f32.gmra.mrb[20].mxu1 %v1009_v54 }
 0x183   : > { %2326 = vmatpush3.bf16.xpose.msra.mxu1 %v2837_v10  ;;  %2306 = vmatprep.subr.bf16.mxu0 %v2305_v33  ;;  %v1013_v10 = vld [vmem:[%s3280_s3 + $0x70] sm:$0xff] }
 0x184   : > { %2319 = vmatprep.subr.bf16.mxu1 %v2305_v33  ;;  %2063 = vmatprep.mubr.f32.mxu1 %v1010_v41 }
 0x186   : > { %2064 = vmatmul.mubr.f32.gmra.mrb[22].mxu1 %v1010_v41 }
 0x187   : > { %2065 = vmatprep.mubr.f32.mxu1 %v1011_v63 }
 0x18a   : > { %2308 = vmatpush3.bf16.xpose.msra.mxu0 %v2848_v20  ;;  %2066 = vmatmul.mubr.f32.gmra.mrb[24].mxu1 %v1011_v63 }
 0x18b   : > { %2327 = vmatpush3.bf16.xpose.msra.mxu1 %v2848_v20  ;;  %2310 = vmatprep.subr.bf16.mxu0 %v2309_v38  ;;  %v2992_v20 = vpop.permute.xlu1 %1043 }
 0x18c   : > { %2320 = vmatprep.subr.bf16.mxu1 %v2309_v38  ;;  %2067 = vmatprep.mubr.f32.mxu1 %v1012_v42 }
 0x18e   : > { %2068 = vmatmul.mubr.f32.gmra.mrb[26].mxu1 %v1012_v42 }
 0x18f   : > { %2069 = vmatprep.mubr.f32.mxu1 %v1013_v10 }
 0x192   : > { %2312 = vmatpush3.bf16.xpose.msra.mxu0 %v2859_v29  ;;  %2070 = vmatmul.mubr.f32.gmra.mrb[28].mxu1 %v1013_v10 }
 0x193   : > { %2328 = vmatpush3.bf16.xpose.msra.mxu1 %v2859_v29  ;;  %2071 = vmatprep.mubr.f32.mxu1 %v1014_v43 }
 0x196   : > { %2072 = vmatmul.mubr.f32.gmra.mrb[30].mxu1 %v1014_v43 }
 0x197   : > { %2119 = vmatprep.mubr.f32.mxu1 %v1006_v3 }
 0x199   : > { %2106 = vmatmul.mubr.f32.vlgmr.msra.gmra.mrb[64].mxu0 %v2679_v7  ;;  %v2990_v7 = vpop.permute.xlu0 %1033 }
 0x19a   : > { %2107 = vmatprep.mubr.f32.mxu0 %v2870_v40  ;;  %2120 = vmatmul.mubr.f32.vlgmr.msra.gmra.mrb[32].mxu1 %v1006_v3 }
 0x19b   : > { %2121 = vmatprep.mubr.f32.mxu1 %v1007_v8 }
 0x19d   : > { %2108 = vmatmul.mubr.f32.gmra.mrb[66].mxu0 %v2870_v40  ;;  %v2994_v29 = vpop.permute.xlu0 %1038  ;;  %v2996_v40 = vpop.permute.xlu1 %1048 }
 0x19e   : > { %2109 = vmatprep.mubr.f32.mxu0 %v2887_v51  ;;  %2122 = vmatmul.mubr.f32.gmra.mrb[34].mxu1 %v1007_v8 }
 0x19f   : > { %2123 = vmatprep.mubr.f32.mxu1 %v1008_v46 }
 0x1a1   : > { %2110 = vmatmul.mubr.f32.gmra.mrb[68].mxu0 %v2887_v51  ;;  %v2998_v45 = vpop.permute.xlu0 %1515  ;;  %v3000_v25 = vpop.permute.xlu1 %1520 }
 0x1a2   : > { %2111 = vmatprep.mubr.f32.mxu0 %v2899_v0  ;;  %2124 = vmatmul.mubr.f32.gmra.mrb[36].mxu1 %v1008_v46 }
 0x1a3   : > { %2125 = vmatprep.mubr.f32.mxu1 %v1009_v54 }
 0x1a5   : > { %2112 = vmatmul.mubr.f32.gmra.mrb[70].mxu0 %v2899_v0  ;;  %v3002_v47 = vpop.permute.xlu0 %1053  ;;  %v3004_v48 = vpop.permute.xlu1 %1525 }
 0x1a6   : > { %2113 = vmatprep.mubr.f32.mxu0 %v2913_v11  ;;  %2126 = vmatmul.mubr.f32.gmra.mrb[38].mxu1 %v1009_v54 }
 0x1a7   : > { %2127 = vmatprep.mubr.f32.mxu1 %v1010_v41 }
 0x1a9   : > { %2114 = vmatmul.mubr.f32.gmra.mrb[72].mxu0 %v2913_v11  ;;  %v3006_v49 = vpop.permute.xlu0 %1058  ;;  %v3008_v50 = vpop.permute.xlu1 %1530 }
 0x1aa   : > { %2115 = vmatprep.mubr.f32.mxu0 %v2922_v18  ;;  %2128 = vmatmul.mubr.f32.gmra.mrb[40].mxu1 %v1010_v41 }
 0x1ab   : > { %2129 = vmatprep.mubr.f32.mxu1 %v1011_v63 }
 0x1ad   : > { %2116 = vmatmul.mubr.f32.gmra.mrb[74].mxu0 %v2922_v18  ;;  %v3010_v51 = vpop.permute.xlu0 %1063  ;;  %v3014_v57 = vpop.permute.xlu1 %1535 }
 0x1ae   : > { %2117 = vmatprep.mubr.f32.mxu0 %v2933_v27  ;;  %2130 = vmatmul.mubr.f32.gmra.mrb[42].mxu1 %v1011_v63 }
 0x1af   : > { %2131 = vmatprep.mubr.f32.mxu1 %v1012_v42 }
 0x1b1   : > { %2118 = vmatmul.mubr.f32.gmra.mrb[76].mxu0 %v2933_v27  ;;  %v3018_v1 = vpop.permute.xlu0 %1068  ;;  %v3022_v9 = vpop.permute.xlu1 %1540 }
 0x1b2   : > { %2132 = vmatmul.mubr.f32.gmra.mrb[44].mxu1 %v1012_v42 }
 0x1b3   : > { %2133 = vmatprep.mubr.f32.mxu1 %v1013_v10 }
 0x1b5   : > { %v3028_v21 = vpop.permute.xlu0 %1073  ;;  %v3034_v28 = vpop.permute.xlu1 %1545 }
 0x1b6   : > { %2134 = vmatmul.mubr.f32.gmra.mrb[46].mxu1 %v1013_v10 }
 0x1b7   : > { %2135 = vmatprep.mubr.f32.mxu1 %v1014_v43 }
 0x1b9   : > { %v3040_v8 = vpop.permute.xlu0 %1078  ;;  %v3042_v10 = vpop.permute.xlu1 %1550 }
 0x1ba   : > { %2136 = vmatmul.mubr.f32.gmra.mrb[48].mxu1 %v1014_v43 }
 0x22d   : > { %v1177_v52 = vpop.f32.mrb[0].mxu1 }
 0x22e   : > { %v1178_v55 = vadd.f32 %v1177_v52, %v2990_v7  ;;  %v1179_v24 = vpop.f32.mrb[1].mxu1 }
 0x22f   : > { %v1180_v56 = vadd.f32 %v1179_v24, %v2990_v7 }
 0x230   : > { %v1433_v58 = vmax.f32 %v1178_v55, 0.0 }
 0x231   : > { %v1434_v59 = vmax.f32 %v1180_v56, 0.0  ;;  %v1183_v53 = vpop.f32.mrb[2].mxu1 }
 0x232   : > { %v1184_v61 = vadd.f32 %v1183_v53, %v2994_v29  ;;  %v1185_v62 = vpop.f32.mrb[3].mxu1  ;;  %v1593_v32 = vmul.f32 %v2998_v45, %v1433_v58 }
 0x233   : > { %v1186_v0 = vadd.f32 %v1185_v62, %v2994_v29  ;;  %v1594_v4 = vmul.f32 %v2998_v45, %v1434_v59 }
 0x234   : > { %v1437_v2 = vmax.f32 %v1184_v61, 0.0 }
 0x235   : > { %v1438_v5 = vmax.f32 %v1186_v0, 0.0  ;;  %v1189_v6 = vpop.f32.mrb[4].mxu1  ;;  %v3048_v0 = vpop.permute.xlu0 %1083 }
 0x236   : > { %v1597_v11 = vmul.f32 %v3000_v25, %v1437_v2  ;;  %v1190_v12 = vadd.f32 %v1189_v6, %v2992_v20  ;;  %v1191_v13 = vpop.f32.mrb[5].mxu1 }
 0x237   : > { %v1598_v35 = vmul.f32 %v3000_v25, %v1438_v5  ;;  %v1192_v14 = vadd.f32 %v1191_v13, %v2992_v20 }
 0x238   : > { %v1657_v16 = vadd.f32 %v1597_v11, %v1593_v32  ;;  %v1441_v60 = vmax.f32 %v1190_v12, 0.0  ;;  %v3054_v11 = vpop.permute.xlu1 %1555 }
 0x239   : > { %v1678_v17 = vadd.f32 %v1598_v35, %v1594_v4  ;;  %v1442_v18 = vmax.f32 %v1192_v14, 0.0  ;;  %v1195_v15 = vpop.f32.mrb[6].mxu1 }
 0x23a   : > { %v1601_v39 = vmul.f32 %v3004_v48, %v1441_v60  ;;  %v1196_v22 = vadd.f32 %v1195_v15, %v2996_v40  ;;  %v1197_v23 = vpop.f32.mrb[7].mxu1 }
 0x23b   : > { %v1602_v26 = vmul.f32 %v3004_v48, %v1442_v18  ;;  %v1198_v27 = vadd.f32 %v1197_v23, %v2996_v40 }
 0x23c   : > { %v1658_v30 = vadd.f32 %v1657_v16, %v1601_v39  ;;  %v1445_v19 = vmax.f32 %v1196_v22, 0.0  ;;  %v3060_v22 = vpop.permute.xlu0 %1088 }
 0x23d   : > { %v1679_v31 = vadd.f32 %v1678_v17, %v1602_v26  ;;  %v1446_v44 = vmax.f32 %v1198_v27, 0.0  ;;  %v1201_v33 = vpop.f32.mrb[8].mxu1 }
 0x23e   : > { %v1605_v34 = vmul.f32 %v3008_v50, %v1445_v19  ;;  %v1202_v36 = vadd.f32 %v1201_v33, %v3002_v47  ;;  %v1203_v3 = vpop.f32.mrb[9].mxu1 }
 0x23f   : > { %v1606_v37 = vmul.f32 %v3008_v50, %v1446_v44  ;;  %v1204_v38 = vadd.f32 %v1203_v3, %v3002_v47 }
 0x240   : > { %v1659_v46 = vadd.f32 %v1658_v30, %v1605_v34  ;;  %v1449_v54 = vmax.f32 %v1202_v36, 0.0 }
 0x241   : > { %v1680_v41 = vadd.f32 %v1679_v31, %v1606_v37  ;;  %v1450_v63 = vmax.f32 %v1204_v38, 0.0  ;;  %v1207_v42 = vpop.f32.mrb[10].mxu1  ;;  %v3062_v31 = vpop.permute.xlu1 %1560 }
 0x242   : > { %v1609_v43 = vmul.f32 %v3014_v57, %v1449_v54  ;;  %v1208_v52 = vadd.f32 %v1207_v42, %v3006_v49  ;;  %v1209_v55 = vpop.f32.mrb[11].mxu1 }
 0x243   : > { %v1610_v24 = vmul.f32 %v3014_v57, %v1450_v63  ;;  %v1210_v56 = vadd.f32 %v1209_v55, %v3006_v49  ;;  %v3068_v63 = vpop.permute.xlu0 %1093 }
 0x244   : > { %v1660_v58 = vadd.f32 %v1659_v46, %v1609_v43  ;;  %v1453_v59 = vmax.f32 %v1208_v52, 0.0 }
 0x245   : > { %v1681_v53 = vadd.f32 %v1680_v41, %v1610_v24  ;;  %v1454_v61 = vmax.f32 %v1210_v56, 0.0  ;;  %v1213_v62 = vpop.f32.mrb[12].mxu1  ;;  %v3074_v56 = vpop.permute.xlu1 %1565 }
 0x246   : > { %v1613_v32 = vmul.f32 %v3022_v9, %v1453_v59  ;;  %v1214_v2 = vadd.f32 %v1213_v62, %v3010_v51  ;;  %v1215_v4 = vpop.f32.mrb[13].mxu1 }
 0x247   : > { %v1614_v5 = vmul.f32 %v3022_v9, %v1454_v61  ;;  %v1216_v6 = vadd.f32 %v1215_v4, %v3010_v51 }
 0x248   : > { %v1661_v12 = vadd.f32 %v1660_v58, %v1613_v32  ;;  %v1457_v13 = vmax.f32 %v1214_v2, 0.0 }
 0x249   : > { %v1682_v35 = vadd.f32 %v1681_v53, %v1614_v5  ;;  %v1458_v14 = vmax.f32 %v1216_v6, 0.0  ;;  %v1219_v16 = vpop.f32.mrb[14].mxu1 }
 0x24a   : > { %v1617_v60 = vmul.f32 %v3034_v28, %v1457_v13  ;;  %v1220_v17 = vadd.f32 %v1219_v16, %v3018_v1  ;;  %v1221_v18 = vpop.f32.mrb[15].mxu1 }
 0x24b   : > { %v1618_v15 = vmul.f32 %v3034_v28, %v1458_v14  ;;  %v1222_v39 = vadd.f32 %v1221_v18, %v3018_v1 }
 0x24c   : > { %v1662_v23 = vadd.f32 %v1661_v12, %v1617_v60  ;;  %v1461_v26 = vmax.f32 %v1220_v17, 0.0  ;;  %v3080_v12 = vpop.permute.xlu0 %1098  ;;  %v3082_v17 = vpop.permute.xlu1 %1570 }
 0x24d   : > { %v1683_v27 = vadd.f32 %v1682_v35, %v1618_v15  ;;  %v1462_v30 = vmax.f32 %v1222_v39, 0.0  ;;  %v1225_v19 = vpop.f32.mrb[16].mxu1 }
 0x24e   : > { %v1621_v44 = vmul.f32 %v3042_v10, %v1461_v26  ;;  %v1226_v33 = vadd.f32 %v1225_v19, %v3028_v21  ;;  %v1227_v34 = vpop.f32.mrb[17].mxu1 }
 0x24f   : > { %v1622_v36 = vmul.f32 %v3042_v10, %v1462_v30  ;;  %v1228_v3 = vadd.f32 %v1227_v34, %v3028_v21 }
 0x250   : > { %v1663_v37 = vadd.f32 %v1662_v23, %v1621_v44  ;;  %v1465_v38 = vmax.f32 %v1226_v33, 0.0  ;;  %v3088_v34 = vpop.permute.xlu0 %1103 }
 0x251   : > { %v1684_v46 = vadd.f32 %v1683_v27, %v1622_v36  ;;  %v1466_v54 = vmax.f32 %v1228_v3, 0.0  ;;  %v1231_v41 = vpop.f32.mrb[18].mxu1 }
 0x252   : > { %v1625_v42 = vmul.f32 %v3054_v11, %v1465_v38  ;;  %v1232_v43 = vadd.f32 %v1231_v41, %v3040_v8  ;;  %v1233_v52 = vpop.f32.mrb[19].mxu1 }
 0x253   : > { %v1626_v55 = vmul.f32 %v3054_v11, %v1466_v54  ;;  %v1234_v24 = vadd.f32 %v1233_v52, %v3040_v8  ;;  %v3094_v54 = vpop.permute.xlu1 %1575 }
 0x254   : > { %v1664_v58 = vadd.f32 %v1663_v37, %v1625_v42  ;;  %v1469_v59 = vmax.f32 %v1232_v43, 0.0 }
 0x255   : > { %v1685_v53 = vadd.f32 %v1684_v46, %v1626_v55  ;;  %v1470_v61 = vmax.f32 %v1234_v24, 0.0  ;;  %v1237_v62 = vpop.f32.mrb[20].mxu1 }
 0x256   : > { %v1238_v32 = vadd.f32 %v1237_v62, %v3048_v0  ;;  %v1239_v2 = vpop.f32.mrb[21].mxu1  ;;  %v1629_v4 = vmul.f32 %v3062_v31, %v1469_v59  ;;  %v3100_v62 = vpop.permute.xlu0 %1108 }
 0x257   : > { %v1240_v5 = vadd.f32 %v1239_v2, %v3048_v0  ;;  %v1630_v6 = vmul.f32 %v3062_v31, %v1470_v61 }
 0x258   : > { %v1473_v13 = vmax.f32 %v1238_v32, 0.0  ;;  %v1665_v35 = vadd.f32 %v1664_v58, %v1629_v4 }
 0x259   : > { %v1474_v14 = vmax.f32 %v1240_v5, 0.0  ;;  %v1686_v16 = vadd.f32 %v1685_v53, %v1630_v6  ;;  %v1243_v60 = vpop.f32.mrb[22].mxu1 }
 0x25a   : > { %v1244_v18 = vadd.f32 %v1243_v60, %v3060_v22  ;;  %v1245_v15 = vpop.f32.mrb[23].mxu1  ;;  %v1633_v39 = vmul.f32 %v3074_v56, %v1473_v13  ;;  %v3102_v13 = vpop.permute.xlu1 %1580 }
 0x25b   : > { %v1246_v23 = vadd.f32 %v1245_v15, %v3060_v22  ;;  %v1634_v26 = vmul.f32 %v3074_v56, %v1474_v14 }
 0x25c   : > { %v1477_v27 = vmax.f32 %v1244_v18, 0.0  ;;  %v1666_v30 = vadd.f32 %v1665_v35, %v1633_v39 }
 0x25d   : > { %v1478_v19 = vmax.f32 %v1246_v23, 0.0  ;;  %v1249_v44 = vpop.f32.mrb[24].mxu1  ;;  %v1687_v33 = vadd.f32 %v1686_v16, %v1634_v26 }
 0x25e   : > { %v1250_v36 = vadd.f32 %v1249_v44, %v3068_v63  ;;  %v1251_v3 = vpop.f32.mrb[25].mxu1  ;;  %v1637_v37 = vmul.f32 %v3082_v17, %v1477_v27 }
 0x25f   : > { %v1252_v38 = vadd.f32 %v1251_v3, %v3068_v63  ;;  %v1638_v46 = vmul.f32 %v3082_v17, %v1478_v19 }
 0x260   : > { %v1481_v41 = vmax.f32 %v1250_v36, 0.0  ;;  %v1667_v42 = vadd.f32 %v1666_v30, %v1637_v37  ;;  %v3108_v30 = vpop.permute.xlu0 %1585 }
 0x261   : > { %v1482_v43 = vmax.f32 %v1252_v38, 0.0  ;;  %v1255_v52 = vpop.f32.mrb[26].mxu1  ;;  %v1688_v55 = vadd.f32 %v1687_v33, %v1638_v46  ;;  %v3114_v38 = vpop.permute.xlu1 %1590 }
 0x262   : > { %v1257_v24 = vpop.f32.mrb[27].mxu1  ;;  %v1256_v58 = vadd.f32 %v1255_v52, %v3080_v12  ;;  %v1641_v59 = vmul.f32 %v3094_v54, %v1481_v41 }
 0x263   : > { %v1258_v53 = vadd.f32 %v1257_v24, %v3080_v12  ;;  %v1642_v61 = vmul.f32 %v3094_v54, %v1482_v43 }
 0x264   : > { %v1485_v32 = vmax.f32 %v1256_v58, 0.0  ;;  %v1668_v2 = vadd.f32 %v1667_v42, %v1641_v59 }
 0x265   : > { %v1486_v4 = vmax.f32 %v1258_v53, 0.0  ;;  %v1261_v5 = vpop.f32.mrb[28].mxu1  ;;  %v1689_v6 = vadd.f32 %v1688_v55, %v1642_v61 }
 0x266   : > { %v1263_v35 = vpop.f32.mrb[29].mxu1  ;;  %v1262_v14 = vadd.f32 %v1261_v5, %v3088_v34  ;;  %v1645_v16 = vmul.f32 %v3102_v13, %v1485_v32 }
 0x267   : > { %v1264_v60 = vadd.f32 %v1263_v35, %v3088_v34  ;;  %v1646_v18 = vmul.f32 %v3102_v13, %v1486_v4 }
 0x268   : > { %v1489_v15 = vmax.f32 %v1262_v14, 0.0  ;;  %v1669_v39 = vadd.f32 %v1668_v2, %v1645_v16 }
 0x269   : > { %v1267_v23 = vpop.f32.mrb[30].mxu1  ;;  %v1490_v26 = vmax.f32 %v1264_v60, 0.0  ;;  %v1690_v27 = vadd.f32 %v1689_v6, %v1646_v18 }
 0x26a   : > { %v1269_v19 = vpop.f32.mrb[31].mxu1  ;;  %v1268_v44 = vadd.f32 %v1267_v23, %v3100_v62  ;;  %v1649_v33 = vmul.f32 %v3108_v30, %v1489_v15 }
 0x26b   : > { %v1270_v36 = vadd.f32 %v1269_v19, %v3100_v62  ;;  %v1650_v3 = vmul.f32 %v3108_v30, %v1490_v26 }
 0x26c   : > { %v1338_v37 = vpop.f32.mrb[64].mxu0  ;;  %v1493_v46 = vmax.f32 %v1268_v44, 0.0  ;;  %v1670_v41 = vadd.f32 %v1669_v39, %v1649_v33 }
 0x26d   : > { %v1339_v42 = vadd.f32 %v1338_v37, %v2990_v7  ;;  %v1340_v43 = vpop.f32.mrb[65].mxu0  ;;  %v3117_v52 = vpop.f32.mrb[32].mxu1  ;;  %v1494_v55 = vmax.f32 %v1270_v36, 0.0  ;;  %v1691_v24 = vadd.f32 %v1690_v27, %v1650_v3 }
 0x26e   : > { %v1341_v58 = vadd.f32 %v1340_v43, %v2990_v7  ;;  %v3120_v59 = vpop.f32.mrb[33].mxu1  ;;  %v1653_v53 = vmul.f32 %v3114_v38, %v1493_v46 }
 0x26f   : > { %v1654_v61 = vmul.f32 %v3114_v38, %v1494_v55  ;;  %v1435_v32 = vmax.f32 %v1339_v42, 0.0 }
 0x270   : > { %v1344_v2 = vpop.f32.mrb[66].mxu0  ;;  %v1671_v4 = vadd.f32 %v1670_v41, %v1653_v53  ;;  %v1436_v16 = vmax.f32 %v1341_v58, 0.0  ;;  %v1747_v53 = vlaneseq }
 0x271   : > { %v1345_v5 = vadd.f32 %v1344_v2, %v2994_v29  ;;  %v1346_v6 = vpop.f32.mrb[67].mxu0  ;;  %v3125_v35 = vpop.f32.mrb[34].mxu1  ;;  %v1692_v14 = vadd.f32 %v1691_v24, %v1654_v61  ;;  %v1595_v39 = vmul.f32 %v2998_v45, %v1435_v32 }
 0x272   : > { %v1347_v60 = vadd.f32 %v1346_v6, %v2994_v29  ;;  %v3128_v18 = vpop.f32.mrb[35].mxu1  ;;  %v1672_v15 = vrot.slane %v1671_v4, 4  ;;  %v1596_v37 = vmul.f32 %v2998_v45, %v1436_v16  ;;  %vm1786_vm1 = vcmp.lt.s32.totalorder %v1747_v53, 512 }
 0x273   : > { %v1439_v7 = vmax.f32 %v1345_v5, 0.0  ;;  %v1693_v3 = vrot.slane %v1692_v14, 4 }
 0x274   : > { %v1440_v23 = vmax.f32 %v1347_v60, 0.0  ;;  %v1350_v26 = vpop.f32.mrb[68].mxu0  ;;  %v1673_v36 = vadd.f32 %v1672_v15, %v1671_v4 }
 0x275   : > { %v1599_v27 = vmul.f32 %v3000_v25, %v1439_v7  ;;  %v1351_v19 = vadd.f32 %v1350_v26, %v2992_v20  ;;  %v1352_v44 = vpop.f32.mrb[69].mxu0  ;;  %v3133_v33 = vpop.f32.mrb[36].mxu1  ;;  %v1694_v5 = vadd.f32 %v1693_v3, %v1692_v14 }
 0x276   : > { %v1600_v29 = vmul.f32 %v3000_v25, %v1440_v23  ;;  %v1353_v46 = vadd.f32 %v1352_v44, %v2992_v20  ;;  %v3138_v41 = vpop.f32.mrb[37].mxu1  ;;  %v1674_v45 = vrot.slane %v1673_v36, 2  ;;  %v3149_v23 = vshrl.u32 %v1747_v53, 7 }
 0x277   : > { %v1699_v42 = vadd.f32 %v1599_v27, %v1595_v39  ;;  %v1443_v43 = vmax.f32 %v1351_v19, 0.0  ;;  %v1695_v44 = vrot.slane %v1694_v5, 2 }
 0x278   : > { %v1720_v55 = vadd.f32 %v1600_v29, %v1596_v37  ;;  %v1444_v24 = vmax.f32 %v1353_v46, 0.0  ;;  %v1356_v58 = vpop.f32.mrb[70].mxu0 }
 0x279   : > { %v1603_v61 = vmul.f32 %v3004_v48, %v1443_v43  ;;  %v1357_v32 = vadd.f32 %v1356_v58, %v2996_v40  ;;  %v1358_v2 = vpop.f32.mrb[71].mxu0  ;;  %v3142_v4 = vpop.f32.mrb[38].mxu1 }
 0x27a   : > { %v1604_v25 = vmul.f32 %v3004_v48, %v1444_v24  ;;  %v1359_v20 = vadd.f32 %v1358_v2, %v2996_v40  ;;  %v3146_v6 = vpop.f32.mrb[39].mxu1  ;;  %v1675_v48 = vadd.f32 %v1674_v45, %v1673_v36  ;;  %v1749_v24 = vsub.s32 0, %v3149_v23  ;;  %v1745_v58 = vpop.permute.xlu0 %1744 }
 0x27b   : > { %v1700_v16 = vadd.f32 %v1699_v42, %v1603_v61  ;;  %v1447_v60 = vmax.f32 %v1357_v32, 0.0  ;;  %v1696_v45 = vadd.f32 %v1695_v44, %v1694_v5  ;;  %v1387_v5 = vadd.f32 %v3125_v35, %v3028_v21 }
 0x27c   : > { %v1721_v7 = vadd.f32 %v1720_v55, %v1604_v25  ;;  %v1448_v15 = vmax.f32 %v1359_v20, 0.0  ;;  %v1362_v39 = vpop.f32.mrb[72].mxu0  ;;  %v1676_v36 = vrot.slane %v1675_v48, 1  ;;  %v1381_v20 = vadd.f32 %v3117_v52, %v3018_v1 }
 0x27d   : > { %v1607_v26 = vmul.f32 %v3008_v50, %v1447_v60  ;;  %v1363_v27 = vadd.f32 %v1362_v39, %v3002_v47  ;;  %v1364_v19 = vpop.f32.mrb[73].mxu0  ;;  %v3153_v14 = vpop.f32.mrb[40].mxu1  ;;  %v1697_v39 = vrot.slane %v1696_v45, 1  ;;  %v3168_v44 = vrot.slane %v1745_v58, %v1749_v24 }
 0x27e   : > { %v1608_v40 = vmul.f32 %v3008_v50, %v1448_v15  ;;  %v1365_v3 = vadd.f32 %v1364_v19, %v3002_v47  ;;  %v1406_v37 = vpop.f32.mrb[41].mxu1  ;;  %v1383_v15 = vadd.f32 %v3120_v59, %v3018_v1  ;;  %v1463_v59 = vmax.f32 %v1381_v20, 0.0 }
 0x27f   : > { %v1701_v29 = vadd.f32 %v1700_v16, %v1607_v26  ;;  %v1451_v46 = vmax.f32 %v1363_v27, 0.0  ;;  %v1393_v58 = vadd.f32 %v3133_v33, %v3040_v8 }
 0x280   : > { %v1722_v42 = vadd.f32 %v1721_v7, %v1608_v40  ;;  %v1452_v43 = vmax.f32 %v1365_v3, 0.0  ;;  %v1368_v55 = vpop.f32.mrb[74].mxu0  ;;  %v1677_v3 = vadd.f32 %v1676_v36, %v1675_v48  ;;  %v1464_v24 = vmax.f32 %v1383_v15, 0.0 }
 0x281   : > { %v1611_v61 = vmul.f32 %v3014_v57, %v1451_v46  ;;  %v1369_v32 = vadd.f32 %v1368_v55, %v3006_v49  ;;  %v1370_v2 = vpop.f32.mrb[75].mxu0  ;;  %v1410_v25 = vpop.f32.mrb[42].mxu1  ;;  %v1395_v48 = vadd.f32 %v3138_v41, %v3040_v8  ;;  %v1401_v8 = vadd.f32 %v3146_v6, %v3048_v0 }
 0x282   : > { %v1612_v50 = vmul.f32 %v3014_v57, %v1452_v43  ;;  %v1371_v47 = vadd.f32 %v1370_v2, %v3006_v49  ;;  %v1412_v16 = vpop.f32.mrb[43].mxu1  ;;  %v1467_v2 = vmax.f32 %v1387_v5, 0.0  ;;  %v1624_v20 = vmul.f32 %v3042_v10, %v1464_v24 }
 0x283   : > { %v1702_v60 = vadd.f32 %v1701_v29, %v1611_v61  ;;  %v1455_v7 = vmax.f32 %v1369_v32, 0.0  ;;  %v1698_v29 = vadd.f32 %v1697_v39, %v1696_v45  ;;  %v1623_v45 = vmul.f32 %v3042_v10, %v1463_v59 }
 0x284   : > { %v1723_v26 = vadd.f32 %v1722_v42, %v1612_v50  ;;  %v1456_v27 = vmax.f32 %v1371_v47, 0.0  ;;  %v1374_v19 = vpop.f32.mrb[76].mxu0  ;;  %v1389_v42 = vadd.f32 %v3128_v18, %v3028_v21  ;;  %v1399_v21 = vadd.f32 %v3142_v4, %v3048_v0 }
 0x285   : > { %v1615_v49 = vmul.f32 %v3022_v9, %v1455_v7  ;;  %v1375_v57 = vadd.f32 %v1374_v19, %v3010_v51  ;;  %v1376_v52 = vpop.f32.mrb[77].mxu0  ;;  %v1416_v40 = vpop.f32.mrb[44].mxu1  ;;  %v3187_v36 = vadd.f32 %v3168_v44, %v1698_v29  ;;  %v1405_v4 = vadd.f32 %v3153_v14, %v3060_v22 }
 0x286   : > { %v1616_v46 = vmul.f32 %v3022_v9, %v1456_v27  ;;  %v1377_v1 = vadd.f32 %v1376_v52, %v3010_v51  ;;  %v1418_v43 = vpop.f32.mrb[45].mxu1  ;;  %v3181_v9 = vadd.f32 %v3168_v44, %v1677_v3  ;;  %v1468_v50 = vmax.f32 %v1389_v42, 0.0 }
 0x287   : > { %v1703_v35 = vadd.f32 %v1702_v60, %v1615_v49  ;;  %v1459_v55 = vmax.f32 %v1375_v57, 0.0  ;;  %v1471_v60 = vmax.f32 %v1393_v58, 0.0  ;;  %v1472_v15 = vmax.f32 %v1395_v48, 0.0 }
 0x288   : > { %v1724_v61 = vadd.f32 %v1723_v26, %v1616_v46  ;;  %v1460_v32 = vmax.f32 %v1377_v1, 0.0  ;;  %v1407_v39 = vadd.f32 %v1406_v37, %v3060_v22  ;;  %v1627_v27 = vmul.f32 %v3054_v11, %v1467_v2 }
 0x289   : > { %v1619_v51 = vmul.f32 %v3034_v28, %v1459_v55  ;;  %v1422_v18 = vpop.f32.mrb[46].mxu1  ;;  %v1475_v19 = vmax.f32 %v1399_v21, 0.0  ;;  %v1411_v0 = vadd.f32 %v1410_v25, %v3068_v63  ;;  %v1628_v10 = vmul.f32 %v3054_v11, %v1468_v50 }
 0x28a   : > { %v1620_v33 = vmul.f32 %v3034_v28, %v1460_v32  ;;  %v1424_v41 = vpop.f32.mrb[47].mxu1  ;;  %v1759_v28 = vcombine.low %v3181_v9, %v3187_v36  ;;  %v1476_v49 = vmax.f32 %v1401_v8, 0.0  ;;  %v1413_v14 = vadd.f32 %v1412_v16, %v3068_v63 }
 0x28b   : > { %v1704_v47 = vadd.f32 %v1703_v35, %v1619_v51  ;;  %v1631_v22 = vmul.f32 %v3062_v31, %v1471_v60  ;;  %v1479_v37 = vmax.f32 %v1405_v4, 0.0  ;;  %v1417_v3 = vadd.f32 %v1416_v40, %v3080_v12 }
 0x28c   : > { %v1725_v7 = vadd.f32 %v1724_v61, %v1620_v33  ;;  %v1632_v46 = vmul.f32 %v3062_v31, %v1472_v15  ;;  %v1480_v1 = vmax.f32 %v1407_v39, 0.0  ;;  %v1419_v25 = vadd.f32 %v1418_v43, %v3080_v12 }
 0x28d   : > { %v1705_v26 = vadd.f32 %v1704_v47, %v1623_v45  ;;  %v1428_v6 = vpop.f32.mrb[48].mxu1  ;;  %v1635_v42 = vmul.f32 %v3074_v56, %v1475_v19  ;;  %v1483_v11 = vmax.f32 %v1411_v0, 0.0  ;;  %v1423_v35 = vadd.f32 %v1422_v18, %v3088_v34 }
 0x28e   : > { %v1726_v5 = vadd.f32 %v1725_v7, %v1624_v20  ;;  %v1430_v57 = vpop.f32.mrb[49].mxu1  ;;  %v1636_v16 = vmul.f32 %v3074_v56, %v1476_v49  ;;  %v1484_v55 = vmax.f32 %v1413_v14, 0.0  ;;  %v1425_v24 = vadd.f32 %v1424_v41, %v3088_v34 }
 0x28f   : > { %v1706_v52 = vadd.f32 %v1705_v26, %v1627_v27  ;;  %v1639_v40 = vmul.f32 %v3082_v17, %v1479_v37  ;;  %v1487_v61 = vmax.f32 %v1417_v3, 0.0  ;;  %v1429_v31 = vadd.f32 %v1428_v6, %v3100_v62 }
 0x290   : > { %v1727_v29 = vadd.f32 %v1726_v5, %v1628_v10  ;;  %v1640_v12 = vmul.f32 %v3082_v17, %v1480_v1  ;;  %v1488_v43 = vmax.f32 %v1419_v25, 0.0  ;;  %v1431_v48 = vadd.f32 %v1430_v57, %v3100_v62 }
 0x291   : > { %v1707_v59 = vadd.f32 %v1706_v52, %v1631_v22  ;;  %v1643_v2 = vmul.f32 %v3094_v54, %v1483_v11  ;;  %v1491_v21 = vmax.f32 %v1423_v35, 0.0  ;;  %v1644_v18 = vmul.f32 %v3094_v54, %v1484_v55 }
 0x292   : > { %v1728_v63 = vadd.f32 %v1727_v29, %v1632_v46  ;;  %v1492_v34 = vmax.f32 %v1425_v24, 0.0  ;;  %v1647_v45 = vmul.f32 %v3102_v13, %v1487_v61  ;;  %v1495_v50 = vmax.f32 %v1429_v31, 0.0 }
 0x293   : > { %v1708_v58 = vadd.f32 %v1707_v59, %v1635_v42  ;;  %v1648_v41 = vmul.f32 %v3102_v13, %v1488_v43  ;;  %v1496_v47 = vmax.f32 %v1431_v48, 0.0  ;;  %v1651_v20 = vmul.f32 %v3108_v30, %v1491_v21 }
 0x294   : > { %v1729_v32 = vadd.f32 %v1728_v63, %v1636_v16  ;;  %v1652_v60 = vmul.f32 %v3108_v30, %v1492_v34  ;;  %v1655_v7 = vmul.f32 %v3114_v38, %v1495_v50  ;;  %v2437_v10 = vmov 1966171168  }
 0x295   : > { %v1709_v51 = vadd.f32 %v1708_v58, %v1639_v40  ;;  %v1656_v54 = vmul.f32 %v3114_v38, %v1496_v47  ;;  %v1762_v49 = vunpack.c.l.s4 %v2437_v10 }
 0x296   : > { %v1730_v56 = vadd.f32 %v1729_v32, %v1640_v12 }
 0x297   : > { %v1710_v33 = vadd.f32 %v1709_v51, %v1643_v2  ;;  %v1763_v22 = vunpack.c.0.s8 %v1762_v49 }
 0x298   : > { %v1731_v8 = vadd.f32 %v1730_v56, %v1644_v18 }
 0x299   : > { %v1711_v17 = vadd.f32 %v1710_v33, %v1647_v45  ;;  %v1766_v29 = vsub.s32 %v1763_v22, %v3149_v23 }
 0x29a   : > { %v1732_v62 = vadd.f32 %v1731_v8, %v1648_v41 }
 0x29b   : > { %v1712_v4 = vadd.f32 %v1711_v17, %v1651_v20  ;;  %v1767_v25 = vrot.slane %v1759_v28, %v1766_v29 }
 0x29c   : > { %v1733_v15 = vadd.f32 %v1732_v62, %v1652_v60 }
 0x29d   : > { %v1713_v39 = vadd.f32 %v1712_v4, %v1655_v7 }
 0x29e   : > { %v1734_v26 = vadd.f32 %v1733_v15, %v1656_v54 }
 0x29f   : > { %v1714_v27 = vrot.slane %v1713_v39, 4 }
 0x2a0   : > { %v1735_v19 = vrot.slane %v1734_v26, 4 }
 0x2a1   : > { %v1715_v0 = vadd.f32 %v1714_v27, %v1713_v39 }
 0x2a2   : > { %v1736_v13 = vadd.f32 %v1735_v19, %v1734_v26 }
 0x2a3   : > { %v1716_v6 = vrot.slane %v1715_v0, 2 }
 0x2a4   : > { %v1737_v5 = vrot.slane %v1736_v13, 2 }
 0x2a5   : > { %v1717_v14 = vadd.f32 %v1716_v6, %v1715_v0 }
 0x2a6   : > { %v1738_v57 = vadd.f32 %v1737_v5, %v1736_v13 }
 0x2a7   : > { %v1718_v30 = vrot.slane %v1717_v14, 1 }
 0x2a8   : > { %v1739_v52 = vrot.slane %v1738_v57, 1 }
 0x2a9   : > { %v1719_v37 = vadd.f32 %v1718_v30, %v1717_v14 }
 0x2aa   : > { %v1740_v38 = vadd.f32 %v1739_v52, %v1738_v57 }
 0x2ab   : > { %v1753_v3 = vadd.f32 %v3168_v44, %v1719_v37 }
 0x2ac   : > { %v1754_v46 = vadd.f32 %v3168_v44, %v1740_v38 }
 0x2ae   : > { %v1760_v1 = vcombine.low %v1753_v3, %v1754_v46 }
 0x2b0   : > { %v1774_v59 = vrot.slane %v1760_v1, %v1766_v29 }
 0x2b2   : > { %v1775_v42 = vcombine.low %v1767_v25, %v1774_v59 }
 0x2b4   : > { %v1782_v11 = vrot.slane %v1775_v42, %v1766_v29 }
 0x2b6   : > { %1788 = vst.msk [vmem:[%s274_s23] sm:$0xf] %vm1786_vm1, %v1782_v11 }
 0x2b7   : > { %2385 = shalt.err (!%p2382_p3)
}
 0x2b8   : > { %s2386_s20 = scalar_lea.hbm %s3235_s6, 64  ;;  %s2390_s19 = scalar_lea.hbm %s3284_s7, 128 }
 0x2b9   : > { %p2387_p4 = scmp.ne.s32.totalorder %s3235_s6, %s2386_s20  ;;  %p2391_p9 = scmp.lt.u32.totalorder %s3235_s6, %s3284_s7 }
 0x2ba   : > { %p2392_p10 = scmp.lt.u32.totalorder %s2390_s19, %s2386_s20  ;;  %p2394_p12 = scmp.lt.u32.totalorder %s2386_s20, %s3235_s6 }
 0x2bb   : > { %p2388_p7 = pnand %p2387_p4, %p2517_p5 }
 0x2bc   : > { %p2393_p11 = por %p2392_p10, %p2391_p9 }
 0x2bd   : > { %p2389_p8 = pneg %p2388_p7 }
 0x2be   : > { %p2395_p13 = por %p2394_p12, %p2393_p11 }
 0x2c0   : > { %p2396_p0 = pnand %p2395_p13, %p2389_p8 }
 0x2c2   : > { %2399 = shalt.err (!%p2396_p0)
}
 0x2c3   : > { %2329 = dma.vmem_to_hbm [thread:$0]  (%p2517_p5), %s3237_s24, 64, %s3235_s6, %s1790_s9  }
 0x2c4 PF: > { %p2335_p1 = scmp.ge.s32.totalorder %s2434_s29, 2  ;;  %s1816_s23 = sand.u32 1, %s2422_s26  }
 0x2c5   : > { %s1817_s25 = scalar_lea.sflag [#allocation4], %s1816_s23 }
 0x2c6   : > { %p2332_p2 = pnand %p2335_p1, %p2521_p6 }
 0x2c8   : > { %2417 = dma.done.wait (!%p2332_p2), %s1817_s25, 64  }
 0x2c9   : > { %2419 = vsyncadd (!%p2332_p2), %s1817_s25, 4294967232  ;;  %p19_p3 = scmp.ge.s32.totalorder %s2505_s8, 4   ;;  %s3287_s26 = smov %s2426_s27 }
 0x2ca   : > { %s3288_s27 = smov %s2430_s28  ;;  %s3289_s28 = smov %s2515_s11 }
 0x2cb   : > { %s3290_s29 = smov %s2505_s8  ;;  %21 = sbr.rel (!%p19_p3) target bundleno = 6 (0x6), region = 83 }
 0x2d2   :  { %1822 = vsyncpa [#allocation4], 1 }
 0x2d3   :  { %1824 = vsyncpa [#allocation4 + $0x1], 1 }

</bundles_post_ra>
